<compile_context>
chip_gen: v7x
topology: tpu7x:2x2x1
jax: 0.10.0
libtpu: 0.0.40
codegen_flags: <defaults>
</compile_context>

<pallas_src>
import jax
import jax.numpy as jnp
from jax.experimental import pallas as pl
from jax.experimental.pallas import tpu as pltpu


# ----------------------------- fused kernel -------------------------------- #

def _build_fused_kernel(num_layers, hidden_size, seq_len, batch_pad):
    H = hidden_size
    T = seq_len
    Bp = batch_pad

    def kernel(x_ref, *refs):
        # refs = [w_ih_0..L-1, w_hh_0..L-1, b_0..L-1, fc_w, fc_b, out_ref]
        w_ih_refs = refs[0:num_layers]
        w_hh_refs = refs[num_layers:2 * num_layers]
        b_refs = refs[2 * num_layers:3 * num_layers]
        fc_w_ref = refs[3 * num_layers]
        fc_b_ref = refs[3 * num_layers + 1]
        out_ref = refs[3 * num_layers + 2]

        # Time-major rows grouped per step: rows [t*Bp, (t+1)*Bp) are step t.
        seq = x_ref[...]                              # (T*Bp, D_in) f32

        h = None
        for layer in range(num_layers):
            w_ih = w_ih_refs[layer][...]              # (D, 4H)  (g cols pre-scaled x2)
            w_hh = w_hh_refs[layer][...]              # (H, 4H)  (g cols pre-scaled x2)
            b = b_refs[layer][...]                    # (1, 4H)  fused b_ih+b_hh (scaled)

            # Hoisted input projection: one MXU matmul for all timesteps,
            # bias broadcast once, kept 2-D -> no relayouts.
            gx = jnp.dot(seq, w_ih,
                         preferred_element_type=jnp.float32) + b   # (T*Bp, 4H)

            h = jnp.zeros((Bp, H), jnp.float32)
            c = jnp.zeros((Bp, H), jnp.float32)
            hs = []
            for t in range(T):                        # short fixed T: unrolled, h/c in vregs
                gates = gx[t * Bp:(t + 1) * Bp] + jnp.dot(
                    h, w_hh, preferred_element_type=jnp.float32)    # (Bp, 4H)
                s = jax.nn.sigmoid(gates)             # single full-vreg EUP push
                i_g = s[:, 0:H]
                f_g = s[:, H:2 * H]
                g_g = 2.0 * s[:, 2 * H:3 * H] - 1.0   # == tanh(g_pre): g cols pre-scaled by 2
                o_g = s[:, 3 * H:4 * H]
                c = f_g * c + i_g * g_g
                h = o_g * jnp.tanh(c)
                hs.append(h)

            if layer + 1 < num_layers:
                # Matmul-ready (T*Bp, H) layout directly; rows are tile-aligned.
                seq = jnp.concatenate(hs, axis=0)
            # inter-layer / pre-fc dropout: identity in eval mode

        # fc head on the last timestep's hidden state of the last layer.
        out_ref[...] = jnp.dot(h, fc_w_ref[...],
                               preferred_element_type=jnp.float32) + fc_b_ref[...]

    return kernel


# ----------------------------- wrapper -------------------------------------- #

def lstm_predictor_forward(x, params):
    """Equivalent of LSTMPredictor.forward (eval mode).

    x: (B, T, I) float32, batch-first (matching nn.LSTM(batch_first=True)).
    """
    B, T, I = x.shape
    layers = params["lstm"]
    num_layers = len(layers)
    H = layers[0]["w_hh"].shape[0]
    O = params["fc_w"].shape[1]

    # Pad batch to a full sublane tile (8 rows): per-step row slices inside the
    # kernel become tile-aligned views, and (B,H) vregs were padded to 8
    # sublanes by the hardware anyway, so this is free.
    Bp = ((B + 7) // 8) * 8

    # Wrapper-side layout plumbing: time-major, batch-padded, flattened 2-D.
    x_tm = jnp.transpose(x, (1, 0, 2)).astype(jnp.float32)        # (T, B, I)
    if Bp != B:
        x_tm = jnp.pad(x_tm, ((0, 0), (0, Bp - B), (0, 0)))
    x_flat = x_tm.reshape(T * Bp, I)                              # (T*Bp, I)

    # Fold tanh(g) = 2*sigmoid(2g) - 1 into the weights: scale the g-gate
    # columns (2H:3H) by 2 so the kernel does one full-width sigmoid per step.
    g_scale = jnp.concatenate([jnp.ones((2 * H,), jnp.float32),
                               jnp.full((H,), 2.0, jnp.float32),
                               jnp.ones((H,), jnp.float32)])

    def scale_g(w):
        return w.astype(jnp.float32) * g_scale

    w_ih = [scale_g(l["w_ih"]) for l in layers]
    w_hh = [scale_g(l["w_hh"]) for l in layers]
    b = [scale_g(l["b"]) for l in layers]
    fc_w = params["fc_w"].astype(jnp.float32)
    fc_b = params["fc_b"].astype(jnp.float32)

    operands = [x_flat] + w_ih + w_hh + b + [fc_w, fc_b]

    def full_spec(a):
        nd = a.ndim
        return pl.BlockSpec(a.shape, lambda i, _nd=nd: (0,) * _nd)

    kernel = _build_fused_kernel(num_layers, H, T, Bp)

    out = pl.pallas_call(
        kernel,
        out_shape=jax.ShapeDtypeStruct((Bp, O), jnp.float32),
        grid=(1,),
        in_specs=[full_spec(a) for a in operands],
        out_specs=pl.BlockSpec((Bp, O), lambda i: (0, 0)),
        compiler_params=pltpu.CompilerParams(
            dimension_semantics=("arbitrary",),
            vmem_limit_bytes=32 * 1024 * 1024,
        ),
    )(*operands)
    return out[:B]


# ----------------------------- reference (pure JAX) ------------------------- #

def lstm_predictor_reference(x, params):
    """Straight-line pure-JAX port of the PyTorch eval-mode forward."""
    B, T, _ = x.shape
    layers = params["lstm"]
    H = layers[0]["w_hh"].shape[0]
    seq = x.astype(jnp.float32)
    h = None
    for l in layers:
        w_ih, w_hh, bb = l["w_ih"], l["w_hh"], l["b"]
        h = jnp.zeros((B, H), jnp.float32)
        c = jnp.zeros((B, H), jnp.float32)
        outs = []
        for t in range(T):
            gates = seq[:, t, :] @ w_ih + h @ w_hh + bb
            i_g = jax.nn.sigmoid(gates[:, 0:H])
            f_g = jax.nn.sigmoid(gates[:, H:2 * H])
            g_g = jnp.tanh(gates[:, 2 * H:3 * H])
            o_g = jax.nn.sigmoid(gates[:, 3 * H:4 * H])
            c = f_g * c + i_g * g_g
            h = o_g * jnp.tanh(c)
            outs.append(h)
        seq = jnp.stack(outs, axis=1)
    return h @ params["fc_w"] + params["fc_b"]


# ----------------------------- parameters ---------------------------------- #

def init_params(key, input_size, hidden_size, num_layers, output_size):
    """Deterministic init matching PyTorch shapes (uniform(-1/sqrt(H), 1/sqrt(H)))."""
    H = hidden_size
    bound = 1.0 / (H ** 0.5)
    params = {"lstm": []}
    keys = jax.random.split(key, num_layers * 4 + 2)
    ki = 0
    for layer in range(num_layers):
        in_dim = input_size if layer == 0 else H
        # PyTorch stores weight_ih_l{k}: (4H, in_dim); we keep the transpose.
        w_ih = jax.random.uniform(keys[ki], (in_dim, 4 * H), jnp.float32,
                                  -bound, bound); ki += 1
        w_hh = jax.random.uniform(keys[ki], (H, 4 * H), jnp.float32,
                                  -bound, bound); ki += 1
        b_ih = jax.random.uniform(keys[ki], (1, 4 * H), jnp.float32,
                                  -bound, bound); ki += 1
        b_hh = jax.random.uniform(keys[ki], (1, 4 * H), jnp.float32,
                                  -bound, bound); ki += 1
        params["lstm"].append({"w_ih": w_ih, "w_hh": w_hh, "b": b_ih + b_hh})
    fc_bound = 1.0 / (H ** 0.5)
    params["fc_w"] = jax.random.uniform(keys[ki], (H, output_size), jnp.float32,
                                        -fc_bound, fc_bound); ki += 1
    params["fc_b"] = jax.random.uniform(keys[ki], (1, output_size), jnp.float32,
                                        -fc_bound, fc_bound)
    return params


# ----------------------------- main ----------------------------------------- #

if __name__ == "__main__":
    B, T = 2, 8
    input_size, hidden_size, num_layers, output_size = 4, 32, 2, 4

    key = jax.random.PRNGKey(0)
    kx, kp = jax.random.split(key)
    x = jax.random.normal(kx, (B, T, input_size), dtype=jnp.float32)
    params = init_params(kp, input_size, hidden_size, num_layers, output_size)

    out = lstm_predictor_forward(x, params)
    out = jax.block_until_ready(out)
    assert out.shape == (B, output_size), out.shape
    assert bool(jnp.all(jnp.isfinite(out)))

    # Verify against a pure-JAX port of the PyTorch eval-mode forward
    # (also validates the 2*sigmoid(2g)-1 == tanh(g) weight-folding trick).
    ref = jax.block_until_ready(lstm_predictor_reference(x, params))
    assert bool(jnp.allclose(out, ref, atol=1e-4, rtol=1e-4)), (out, ref)

    print("KERNEL_OK")
</pallas_src>

<mosaic_0001>
module attributes {stable_mosaic.version = 11 : i64} {
  func.func @kernel(%arg0: i32, %arg1: memref<64x4xf32, #tpu.memory_space<vmem>>, %arg2: memref<4x128xf32, #tpu.memory_space<vmem>>, %arg3: memref<32x128xf32, #tpu.memory_space<vmem>>, %arg4: memref<32x128xf32, #tpu.memory_space<vmem>>, %arg5: memref<32x128xf32, #tpu.memory_space<vmem>>, %arg6: memref<1x128xf32, #tpu.memory_space<vmem>>, %arg7: memref<1x128xf32, #tpu.memory_space<vmem>>, %arg8: memref<32x4xf32, #tpu.memory_space<vmem>>, %arg9: memref<1x4xf32, #tpu.memory_space<vmem>>, %arg10: memref<8x4xf32, #tpu.memory_space<vmem>>) attributes {dimension_semantics = [#tpu.dimension_semantics<arbitrary>], iteration_bounds = array<i64: 1>, scalar_prefetch = 0 : i64, scratch_operands = 0 : i64, tpu.core_type = #tpu.core_type<tc>, window_params = [{pipeline_mode = #tpu.pipeline_mode<synchronous>, transform_indices = @transform_0, window_bounds = array<i64: 64, 4>}, {pipeline_mode = #tpu.pipeline_mode<synchronous>, transform_indices = @transform_1, window_bounds = array<i64: 4, 128>}, {pipeline_mode = #tpu.pipeline_mode<synchronous>, transform_indices = @transform_2, window_bounds = array<i64: 32, 128>}, {pipeline_mode = #tpu.pipeline_mode<synchronous>, transform_indices = @transform_3, window_bounds = array<i64: 32, 128>}, {pipeline_mode = #tpu.pipeline_mode<synchronous>, transform_indices = @transform_4, window_bounds = array<i64: 32, 128>}, {pipeline_mode = #tpu.pipeline_mode<synchronous>, transform_indices = @transform_5, window_bounds = array<i64: 1, 128>}, {pipeline_mode = #tpu.pipeline_mode<synchronous>, transform_indices = @transform_6, window_bounds = array<i64: 1, 128>}, {pipeline_mode = #tpu.pipeline_mode<synchronous>, transform_indices = @transform_7, window_bounds = array<i64: 32, 4>}, {pipeline_mode = #tpu.pipeline_mode<synchronous>, transform_indices = @transform_8, window_bounds = array<i64: 1, 4>}, {pipeline_mode = #tpu.pipeline_mode<synchronous>, transform_indices = @transform_9, window_bounds = array<i64: 8, 4>}]} {
    %c0 = arith.constant 0 : index
    %c0_0 = arith.constant 0 : index
    %0 = vector.load %arg1[%c0, %c0_0] : memref<64x4xf32, #tpu.memory_space<vmem>>, vector<64x4xf32>
    %c0_1 = arith.constant 0 : index
    %c0_2 = arith.constant 0 : index
    %1 = vector.load %arg2[%c0_1, %c0_2] : memref<4x128xf32, #tpu.memory_space<vmem>>, vector<4x128xf32>
    %c0_3 = arith.constant 0 : index
    %c0_4 = arith.constant 0 : index
    %2 = vector.load %arg4[%c0_3, %c0_4] : memref<32x128xf32, #tpu.memory_space<vmem>>, vector<32x128xf32>
    %c0_5 = arith.constant 0 : index
    %c0_6 = arith.constant 0 : index
    %3 = vector.load %arg6[%c0_5, %c0_6] : memref<1x128xf32, #tpu.memory_space<vmem>>, vector<1x128xf32>
    %cst = arith.constant dense<0.000000e+00> : vector<64x128xf32>
    %4 = tpu.matmul %0, %1, %cst {dimension_numbers = #tpu.dot_dimension_numbers<[1], [0], [0], [1], [0, 0, 1, 1], [], []>} : vector<64x4xf32>, vector<4x128xf32>, vector<64x128xf32> -> vector<64x128xf32>
    %5 = vector.broadcast %3 : vector<1x128xf32> to vector<64x128xf32>
    %6 = arith.addf %4, %5 : vector<64x128xf32>
    %cst_7 = arith.constant 0.000000e+00 : f32
    %7 = vector.broadcast %cst_7 : f32 to vector<8x32xf32>
    %cst_8 = arith.constant 0.000000e+00 : f32
    %8 = vector.broadcast %cst_8 : f32 to vector<8x32xf32>
    %9 = vector.extract_strided_slice %6 {offsets = [0, 0], sizes = [8, 128], strides = [1, 1]} : vector<64x128xf32> to vector<8x128xf32>
    %cst_9 = arith.constant dense<0.000000e+00> : vector<8x128xf32>
    %10 = tpu.matmul %7, %2, %cst_9 {dimension_numbers = #tpu.dot_dimension_numbers<[1], [0], [0], [1], [0, 0, 1, 1], [], []>} : vector<8x32xf32>, vector<32x128xf32>, vector<8x128xf32> -> vector<8x128xf32>
    %11 = arith.addf %9, %10 : vector<8x128xf32>
    %12 = arith.negf %11 : vector<8x128xf32>
    %13 = math.exp %12 : vector<8x128xf32>
    %cst_10 = arith.constant 1.000000e+00 : f32
    %14 = vector.broadcast %cst_10 : f32 to vector<8x128xf32>
    %15 = arith.addf %14, %13 : vector<8x128xf32>
    %16 = arith.divf %14, %15 : vector<8x128xf32>
    %17 = vector.extract_strided_slice %16 {offsets = [0, 0], sizes = [8, 32], strides = [1, 1]} : vector<8x128xf32> to vector<8x32xf32>
    %18 = vector.extract_strided_slice %16 {offsets = [0, 32], sizes = [8, 32], strides = [1, 1]} : vector<8x128xf32> to vector<8x32xf32>
    %19 = vector.extract_strided_slice %16 {offsets = [0, 64], sizes = [8, 32], strides = [1, 1]} : vector<8x128xf32> to vector<8x32xf32>
    %cst_11 = arith.constant 2.000000e+00 : f32
    %20 = vector.broadcast %cst_11 : f32 to vector<8x32xf32>
    %21 = arith.mulf %20, %19 : vector<8x32xf32>
    %cst_12 = arith.constant 1.000000e+00 : f32
    %22 = vector.broadcast %cst_12 : f32 to vector<8x32xf32>
    %23 = arith.subf %21, %22 : vector<8x32xf32>
    %24 = vector.extract_strided_slice %16 {offsets = [0, 96], sizes = [8, 32], strides = [1, 1]} : vector<8x128xf32> to vector<8x32xf32>
    %25 = arith.mulf %18, %8 : vector<8x32xf32>
    %26 = arith.mulf %17, %23 : vector<8x32xf32>
    %27 = arith.addf %25, %26 : vector<8x32xf32>
    %28 = math.tanh %27 : vector<8x32xf32>
    %29 = arith.mulf %24, %28 : vector<8x32xf32>
    %30 = vector.extract_strided_slice %6 {offsets = [8, 0], sizes = [8, 128], strides = [1, 1]} : vector<64x128xf32> to vector<8x128xf32>
    %cst_13 = arith.constant dense<0.000000e+00> : vector<8x128xf32>
    %31 = tpu.matmul %29, %2, %cst_13 {dimension_numbers = #tpu.dot_dimension_numbers<[1], [0], [0], [1], [0, 0, 1, 1], [], []>} : vector<8x32xf32>, vector<32x128xf32>, vector<8x128xf32> -> vector<8x128xf32>
    %32 = arith.addf %30, %31 : vector<8x128xf32>
    %33 = arith.negf %32 : vector<8x128xf32>
    %34 = math.exp %33 : vector<8x128xf32>
    %cst_14 = arith.constant 1.000000e+00 : f32
    %35 = vector.broadcast %cst_14 : f32 to vector<8x128xf32>
    %36 = arith.addf %35, %34 : vector<8x128xf32>
    %37 = arith.divf %35, %36 : vector<8x128xf32>
    %38 = vector.extract_strided_slice %37 {offsets = [0, 0], sizes = [8, 32], strides = [1, 1]} : vector<8x128xf32> to vector<8x32xf32>
    %39 = vector.extract_strided_slice %37 {offsets = [0, 32], sizes = [8, 32], strides = [1, 1]} : vector<8x128xf32> to vector<8x32xf32>
    %40 = vector.extract_strided_slice %37 {offsets = [0, 64], sizes = [8, 32], strides = [1, 1]} : vector<8x128xf32> to vector<8x32xf32>
    %cst_15 = arith.constant 2.000000e+00 : f32
    %41 = vector.broadcast %cst_15 : f32 to vector<8x32xf32>
    %42 = arith.mulf %41, %40 : vector<8x32xf32>
    %cst_16 = arith.constant 1.000000e+00 : f32
    %43 = vector.broadcast %cst_16 : f32 to vector<8x32xf32>
    %44 = arith.subf %42, %43 : vector<8x32xf32>
    %45 = vector.extract_strided_slice %37 {offsets = [0, 96], sizes = [8, 32], strides = [1, 1]} : vector<8x128xf32> to vector<8x32xf32>
    %46 = arith.mulf %39, %27 : vector<8x32xf32>
    %47 = arith.mulf %38, %44 : vector<8x32xf32>
    %48 = arith.addf %46, %47 : vector<8x32xf32>
    %49 = math.tanh %48 : vector<8x32xf32>
    %50 = arith.mulf %45, %49 : vector<8x32xf32>
    %51 = vector.extract_strided_slice %6 {offsets = [16, 0], sizes = [8, 128], strides = [1, 1]} : vector<64x128xf32> to vector<8x128xf32>
    %cst_17 = arith.constant dense<0.000000e+00> : vector<8x128xf32>
    %52 = tpu.matmul %50, %2, %cst_17 {dimension_numbers = #tpu.dot_dimension_numbers<[1], [0], [0], [1], [0, 0, 1, 1], [], []>} : vector<8x32xf32>, vector<32x128xf32>, vector<8x128xf32> -> vector<8x128xf32>
    %53 = arith.addf %51, %52 : vector<8x128xf32>
    %54 = arith.negf %53 : vector<8x128xf32>
    %55 = math.exp %54 : vector<8x128xf32>
    %cst_18 = arith.constant 1.000000e+00 : f32
    %56 = vector.broadcast %cst_18 : f32 to vector<8x128xf32>
    %57 = arith.addf %56, %55 : vector<8x128xf32>
    %58 = arith.divf %56, %57 : vector<8x128xf32>
    %59 = vector.extract_strided_slice %58 {offsets = [0, 0], sizes = [8, 32], strides = [1, 1]} : vector<8x128xf32> to vector<8x32xf32>
    %60 = vector.extract_strided_slice %58 {offsets = [0, 32], sizes = [8, 32], strides = [1, 1]} : vector<8x128xf32> to vector<8x32xf32>
    %61 = vector.extract_strided_slice %58 {offsets = [0, 64], sizes = [8, 32], strides = [1, 1]} : vector<8x128xf32> to vector<8x32xf32>
    %cst_19 = arith.constant 2.000000e+00 : f32
    %62 = vector.broadcast %cst_19 : f32 to vector<8x32xf32>
    %63 = arith.mulf %62, %61 : vector<8x32xf32>
    %cst_20 = arith.constant 1.000000e+00 : f32
    %64 = vector.broadcast %cst_20 : f32 to vector<8x32xf32>
    %65 = arith.subf %63, %64 : vector<8x32xf32>
    %66 = vector.extract_strided_slice %58 {offsets = [0, 96], sizes = [8, 32], strides = [1, 1]} : vector<8x128xf32> to vector<8x32xf32>
    %67 = arith.mulf %60, %48 : vector<8x32xf32>
    %68 = arith.mulf %59, %65 : vector<8x32xf32>
    %69 = arith.addf %67, %68 : vector<8x32xf32>
    %70 = math.tanh %69 : vector<8x32xf32>
    %71 = arith.mulf %66, %70 : vector<8x32xf32>
    %72 = vector.extract_strided_slice %6 {offsets = [24, 0], sizes = [8, 128], strides = [1, 1]} : vector<64x128xf32> to vector<8x128xf32>
    %cst_21 = arith.constant dense<0.000000e+00> : vector<8x128xf32>
    %73 = tpu.matmul %71, %2, %cst_21 {dimension_numbers = #tpu.dot_dimension_numbers<[1], [0], [0], [1], [0, 0, 1, 1], [], []>} : vector<8x32xf32>, vector<32x128xf32>, vector<8x128xf32> -> vector<8x128xf32>
    %74 = arith.addf %72, %73 : vector<8x128xf32>
    %75 = arith.negf %74 : vector<8x128xf32>
    %76 = math.exp %75 : vector<8x128xf32>
    %cst_22 = arith.constant 1.000000e+00 : f32
    %77 = vector.broadcast %cst_22 : f32 to vector<8x128xf32>
    %78 = arith.addf %77, %76 : vector<8x128xf32>
    %79 = arith.divf %77, %78 : vector<8x128xf32>
    %80 = vector.extract_strided_slice %79 {offsets = [0, 0], sizes = [8, 32], strides = [1, 1]} : vector<8x128xf32> to vector<8x32xf32>
    %81 = vector.extract_strided_slice %79 {offsets = [0, 32], sizes = [8, 32], strides = [1, 1]} : vector<8x128xf32> to vector<8x32xf32>
    %82 = vector.extract_strided_slice %79 {offsets = [0, 64], sizes = [8, 32], strides = [1, 1]} : vector<8x128xf32> to vector<8x32xf32>
    %cst_23 = arith.constant 2.000000e+00 : f32
    %83 = vector.broadcast %cst_23 : f32 to vector<8x32xf32>
    %84 = arith.mulf %83, %82 : vector<8x32xf32>
    %cst_24 = arith.constant 1.000000e+00 : f32
    %85 = vector.broadcast %cst_24 : f32 to vector<8x32xf32>
    %86 = arith.subf %84, %85 : vector<8x32xf32>
    %87 = vector.extract_strided_slice %79 {offsets = [0, 96], sizes = [8, 32], strides = [1, 1]} : vector<8x128xf32> to vector<8x32xf32>
    %88 = arith.mulf %81, %69 : vector<8x32xf32>
    %89 = arith.mulf %80, %86 : vector<8x32xf32>
    %90 = arith.addf %88, %89 : vector<8x32xf32>
    %91 = math.tanh %90 : vector<8x32xf32>
    %92 = arith.mulf %87, %91 : vector<8x32xf32>
    %93 = vector.extract_strided_slice %6 {offsets = [32, 0], sizes = [8, 128], strides = [1, 1]} : vector<64x128xf32> to vector<8x128xf32>
    %cst_25 = arith.constant dense<0.000000e+00> : vector<8x128xf32>
    %94 = tpu.matmul %92, %2, %cst_25 {dimension_numbers = #tpu.dot_dimension_numbers<[1], [0], [0], [1], [0, 0, 1, 1], [], []>} : vector<8x32xf32>, vector<32x128xf32>, vector<8x128xf32> -> vector<8x128xf32>
    %95 = arith.addf %93, %94 : vector<8x128xf32>
    %96 = arith.negf %95 : vector<8x128xf32>
    %97 = math.exp %96 : vector<8x128xf32>
    %cst_26 = arith.constant 1.000000e+00 : f32
    %98 = vector.broadcast %cst_26 : f32 to vector<8x128xf32>
    %99 = arith.addf %98, %97 : vector<8x128xf32>
    %100 = arith.divf %98, %99 : vector<8x128xf32>
    %101 = vector.extract_strided_slice %100 {offsets = [0, 0], sizes = [8, 32], strides = [1, 1]} : vector<8x128xf32> to vector<8x32xf32>
    %102 = vector.extract_strided_slice %100 {offsets = [0, 32], sizes = [8, 32], strides = [1, 1]} : vector<8x128xf32> to vector<8x32xf32>
    %103 = vector.extract_strided_slice %100 {offsets = [0, 64], sizes = [8, 32], strides = [1, 1]} : vector<8x128xf32> to vector<8x32xf32>
    %cst_27 = arith.constant 2.000000e+00 : f32
    %104 = vector.broadcast %cst_27 : f32 to vector<8x32xf32>
    %105 = arith.mulf %104, %103 : vector<8x32xf32>
    %cst_28 = arith.constant 1.000000e+00 : f32
    %106 = vector.broadcast %cst_28 : f32 to vector<8x32xf32>
    %107 = arith.subf %105, %106 : vector<8x32xf32>
    %108 = vector.extract_strided_slice %100 {offsets = [0, 96], sizes = [8, 32], strides = [1, 1]} : vector<8x128xf32> to vector<8x32xf32>
    %109 = arith.mulf %102, %90 : vector<8x32xf32>
    %110 = arith.mulf %101, %107 : vector<8x32xf32>
    %111 = arith.addf %109, %110 : vector<8x32xf32>
    %112 = math.tanh %111 : vector<8x32xf32>
    %113 = arith.mulf %108, %112 : vector<8x32xf32>
    %114 = vector.extract_strided_slice %6 {offsets = [40, 0], sizes = [8, 128], strides = [1, 1]} : vector<64x128xf32> to vector<8x128xf32>
    %cst_29 = arith.constant dense<0.000000e+00> : vector<8x128xf32>
    %115 = tpu.matmul %113, %2, %cst_29 {dimension_numbers = #tpu.dot_dimension_numbers<[1], [0], [0], [1], [0, 0, 1, 1], [], []>} : vector<8x32xf32>, vector<32x128xf32>, vector<8x128xf32> -> vector<8x128xf32>
    %116 = arith.addf %114, %115 : vector<8x128xf32>
    %117 = arith.negf %116 : vector<8x128xf32>
    %118 = math.exp %117 : vector<8x128xf32>
    %cst_30 = arith.constant 1.000000e+00 : f32
    %119 = vector.broadcast %cst_30 : f32 to vector<8x128xf32>
    %120 = arith.addf %119, %118 : vector<8x128xf32>
    %121 = arith.divf %119, %120 : vector<8x128xf32>
    %122 = vector.extract_strided_slice %121 {offsets = [0, 0], sizes = [8, 32], strides = [1, 1]} : vector<8x128xf32> to vector<8x32xf32>
    %123 = vector.extract_strided_slice %121 {offsets = [0, 32], sizes = [8, 32], strides = [1, 1]} : vector<8x128xf32> to vector<8x32xf32>
    %124 = vector.extract_strided_slice %121 {offsets = [0, 64], sizes = [8, 32], strides = [1, 1]} : vector<8x128xf32> to vector<8x32xf32>
    %cst_31 = arith.constant 2.000000e+00 : f32
    %125 = vector.broadcast %cst_31 : f32 to vector<8x32xf32>
    %126 = arith.mulf %125, %124 : vector<8x32xf32>
    %cst_32 = arith.constant 1.000000e+00 : f32
    %127 = vector.broadcast %cst_32 : f32 to vector<8x32xf32>
    %128 = arith.subf %126, %127 : vector<8x32xf32>
    %129 = vector.extract_strided_slice %121 {offsets = [0, 96], sizes = [8, 32], strides = [1, 1]} : vector<8x128xf32> to vector<8x32xf32>
    %130 = arith.mulf %123, %111 : vector<8x32xf32>
    %131 = arith.mulf %122, %128 : vector<8x32xf32>
    %132 = arith.addf %130, %131 : vector<8x32xf32>
    %133 = math.tanh %132 : vector<8x32xf32>
    %134 = arith.mulf %129, %133 : vector<8x32xf32>
    %135 = vector.extract_strided_slice %6 {offsets = [48, 0], sizes = [8, 128], strides = [1, 1]} : vector<64x128xf32> to vector<8x128xf32>
    %cst_33 = arith.constant dense<0.000000e+00> : vector<8x128xf32>
    %136 = tpu.matmul %134, %2, %cst_33 {dimension_numbers = #tpu.dot_dimension_numbers<[1], [0], [0], [1], [0, 0, 1, 1], [], []>} : vector<8x32xf32>, vector<32x128xf32>, vector<8x128xf32> -> vector<8x128xf32>
    %137 = arith.addf %135, %136 : vector<8x128xf32>
    %138 = arith.negf %137 : vector<8x128xf32>
    %139 = math.exp %138 : vector<8x128xf32>
    %cst_34 = arith.constant 1.000000e+00 : f32
    %140 = vector.broadcast %cst_34 : f32 to vector<8x128xf32>
    %141 = arith.addf %140, %139 : vector<8x128xf32>
    %142 = arith.divf %140, %141 : vector<8x128xf32>
    %143 = vector.extract_strided_slice %142 {offsets = [0, 0], sizes = [8, 32], strides = [1, 1]} : vector<8x128xf32> to vector<8x32xf32>
    %144 = vector.extract_strided_slice %142 {offsets = [0, 32], sizes = [8, 32], strides = [1, 1]} : vector<8x128xf32> to vector<8x32xf32>
    %145 = vector.extract_strided_slice %142 {offsets = [0, 64], sizes = [8, 32], strides = [1, 1]} : vector<8x128xf32> to vector<8x32xf32>
    %cst_35 = arith.constant 2.000000e+00 : f32
    %146 = vector.broadcast %cst_35 : f32 to vector<8x32xf32>
    %147 = arith.mulf %146, %145 : vector<8x32xf32>
    %cst_36 = arith.constant 1.000000e+00 : f32
    %148 = vector.broadcast %cst_36 : f32 to vector<8x32xf32>
    %149 = arith.subf %147, %148 : vector<8x32xf32>
    %150 = vector.extract_strided_slice %142 {offsets = [0, 96], sizes = [8, 32], strides = [1, 1]} : vector<8x128xf32> to vector<8x32xf32>
    %151 = arith.mulf %144, %132 : vector<8x32xf32>
    %152 = arith.mulf %143, %149 : vector<8x32xf32>
    %153 = arith.addf %151, %152 : vector<8x32xf32>
    %154 = math.tanh %153 : vector<8x32xf32>
    %155 = arith.mulf %150, %154 : vector<8x32xf32>
    %156 = vector.extract_strided_slice %6 {offsets = [56, 0], sizes = [8, 128], strides = [1, 1]} : vector<64x128xf32> to vector<8x128xf32>
    %cst_37 = arith.constant dense<0.000000e+00> : vector<8x128xf32>
    %157 = tpu.matmul %155, %2, %cst_37 {dimension_numbers = #tpu.dot_dimension_numbers<[1], [0], [0], [1], [0, 0, 1, 1], [], []>} : vector<8x32xf32>, vector<32x128xf32>, vector<8x128xf32> -> vector<8x128xf32>
    %158 = arith.addf %156, %157 : vector<8x128xf32>
    %159 = arith.negf %158 : vector<8x128xf32>
    %160 = math.exp %159 : vector<8x128xf32>
    %cst_38 = arith.constant 1.000000e+00 : f32
    %161 = vector.broadcast %cst_38 : f32 to vector<8x128xf32>
    %162 = arith.addf %161, %160 : vector<8x128xf32>
    %163 = arith.divf %161, %162 : vector<8x128xf32>
    %164 = vector.extract_strided_slice %163 {offsets = [0, 0], sizes = [8, 32], strides = [1, 1]} : vector<8x128xf32> to vector<8x32xf32>
    %165 = vector.extract_strided_slice %163 {offsets = [0, 32], sizes = [8, 32], strides = [1, 1]} : vector<8x128xf32> to vector<8x32xf32>
    %166 = vector.extract_strided_slice %163 {offsets = [0, 64], sizes = [8, 32], strides = [1, 1]} : vector<8x128xf32> to vector<8x32xf32>
    %cst_39 = arith.constant 2.000000e+00 : f32
    %167 = vector.broadcast %cst_39 : f32 to vector<8x32xf32>
    %168 = arith.mulf %167, %166 : vector<8x32xf32>
    %cst_40 = arith.constant 1.000000e+00 : f32
    %169 = vector.broadcast %cst_40 : f32 to vector<8x32xf32>
    %170 = arith.subf %168, %169 : vector<8x32xf32>
    %171 = vector.extract_strided_slice %163 {offsets = [0, 96], sizes = [8, 32], strides = [1, 1]} : vector<8x128xf32> to vector<8x32xf32>
    %172 = arith.mulf %165, %153 : vector<8x32xf32>
    %173 = arith.mulf %164, %170 : vector<8x32xf32>
    %174 = arith.addf %172, %173 : vector<8x32xf32>
    %175 = math.tanh %174 : vector<8x32xf32>
    %176 = arith.mulf %171, %175 : vector<8x32xf32>
    %177 = tpu.concatenate %29, %50, %71, %92, %113, %134, %155, %176 in 0 : vector<8x32xf32>, vector<8x32xf32>, vector<8x32xf32>, vector<8x32xf32>, vector<8x32xf32>, vector<8x32xf32>, vector<8x32xf32>, vector<8x32xf32> -> vector<64x32xf32>
    %c0_41 = arith.constant 0 : index
    %c0_42 = arith.constant 0 : index
    %178 = vector.load %arg3[%c0_41, %c0_42] : memref<32x128xf32, #tpu.memory_space<vmem>>, vector<32x128xf32>
    %c0_43 = arith.constant 0 : index
    %c0_44 = arith.constant 0 : index
    %179 = vector.load %arg5[%c0_43, %c0_44] : memref<32x128xf32, #tpu.memory_space<vmem>>, vector<32x128xf32>
    %c0_45 = arith.constant 0 : index
    %c0_46 = arith.constant 0 : index
    %180 = vector.load %arg7[%c0_45, %c0_46] : memref<1x128xf32, #tpu.memory_space<vmem>>, vector<1x128xf32>
    %cst_47 = arith.constant dense<0.000000e+00> : vector<64x128xf32>
    %181 = tpu.matmul %177, %178, %cst_47 {dimension_numbers = #tpu.dot_dimension_numbers<[1], [0], [0], [1], [0, 0, 1, 1], [], []>} : vector<64x32xf32>, vector<32x128xf32>, vector<64x128xf32> -> vector<64x128xf32>
    %182 = vector.broadcast %180 : vector<1x128xf32> to vector<64x128xf32>
    %183 = arith.addf %181, %182 : vector<64x128xf32>
    %cst_48 = arith.constant 0.000000e+00 : f32
    %184 = vector.broadcast %cst_48 : f32 to vector<8x32xf32>
    %cst_49 = arith.constant 0.000000e+00 : f32
    %185 = vector.broadcast %cst_49 : f32 to vector<8x32xf32>
    %186 = vector.extract_strided_slice %183 {offsets = [0, 0], sizes = [8, 128], strides = [1, 1]} : vector<64x128xf32> to vector<8x128xf32>
    %cst_50 = arith.constant dense<0.000000e+00> : vector<8x128xf32>
    %187 = tpu.matmul %184, %179, %cst_50 {dimension_numbers = #tpu.dot_dimension_numbers<[1], [0], [0], [1], [0, 0, 1, 1], [], []>} : vector<8x32xf32>, vector<32x128xf32>, vector<8x128xf32> -> vector<8x128xf32>
    %188 = arith.addf %186, %187 : vector<8x128xf32>
    %189 = arith.negf %188 : vector<8x128xf32>
    %190 = math.exp %189 : vector<8x128xf32>
    %cst_51 = arith.constant 1.000000e+00 : f32
    %191 = vector.broadcast %cst_51 : f32 to vector<8x128xf32>
    %192 = arith.addf %191, %190 : vector<8x128xf32>
    %193 = arith.divf %191, %192 : vector<8x128xf32>
    %194 = vector.extract_strided_slice %193 {offsets = [0, 0], sizes = [8, 32], strides = [1, 1]} : vector<8x128xf32> to vector<8x32xf32>
    %195 = vector.extract_strided_slice %193 {offsets = [0, 32], sizes = [8, 32], strides = [1, 1]} : vector<8x128xf32> to vector<8x32xf32>
    %196 = vector.extract_strided_slice %193 {offsets = [0, 64], sizes = [8, 32], strides = [1, 1]} : vector<8x128xf32> to vector<8x32xf32>
    %cst_52 = arith.constant 2.000000e+00 : f32
    %197 = vector.broadcast %cst_52 : f32 to vector<8x32xf32>
    %198 = arith.mulf %197, %196 : vector<8x32xf32>
    %cst_53 = arith.constant 1.000000e+00 : f32
    %199 = vector.broadcast %cst_53 : f32 to vector<8x32xf32>
    %200 = arith.subf %198, %199 : vector<8x32xf32>
    %201 = vector.extract_strided_slice %193 {offsets = [0, 96], sizes = [8, 32], strides = [1, 1]} : vector<8x128xf32> to vector<8x32xf32>
    %202 = arith.mulf %195, %185 : vector<8x32xf32>
    %203 = arith.mulf %194, %200 : vector<8x32xf32>
    %204 = arith.addf %202, %203 : vector<8x32xf32>
    %205 = math.tanh %204 : vector<8x32xf32>
    %206 = arith.mulf %201, %205 : vector<8x32xf32>
    %207 = vector.extract_strided_slice %183 {offsets = [8, 0], sizes = [8, 128], strides = [1, 1]} : vector<64x128xf32> to vector<8x128xf32>
    %cst_54 = arith.constant dense<0.000000e+00> : vector<8x128xf32>
    %208 = tpu.matmul %206, %179, %cst_54 {dimension_numbers = #tpu.dot_dimension_numbers<[1], [0], [0], [1], [0, 0, 1, 1], [], []>} : vector<8x32xf32>, vector<32x128xf32>, vector<8x128xf32> -> vector<8x128xf32>
    %209 = arith.addf %207, %208 : vector<8x128xf32>
    %210 = arith.negf %209 : vector<8x128xf32>
    %211 = math.exp %210 : vector<8x128xf32>
    %cst_55 = arith.constant 1.000000e+00 : f32
    %212 = vector.broadcast %cst_55 : f32 to vector<8x128xf32>
    %213 = arith.addf %212, %211 : vector<8x128xf32>
    %214 = arith.divf %212, %213 : vector<8x128xf32>
    %215 = vector.extract_strided_slice %214 {offsets = [0, 0], sizes = [8, 32], strides = [1, 1]} : vector<8x128xf32> to vector<8x32xf32>
    %216 = vector.extract_strided_slice %214 {offsets = [0, 32], sizes = [8, 32], strides = [1, 1]} : vector<8x128xf32> to vector<8x32xf32>
    %217 = vector.extract_strided_slice %214 {offsets = [0, 64], sizes = [8, 32], strides = [1, 1]} : vector<8x128xf32> to vector<8x32xf32>
    %cst_56 = arith.constant 2.000000e+00 : f32
    %218 = vector.broadcast %cst_56 : f32 to vector<8x32xf32>
    %219 = arith.mulf %218, %217 : vector<8x32xf32>
    %cst_57 = arith.constant 1.000000e+00 : f32
    %220 = vector.broadcast %cst_57 : f32 to vector<8x32xf32>
    %221 = arith.subf %219, %220 : vector<8x32xf32>
    %222 = vector.extract_strided_slice %214 {offsets = [0, 96], sizes = [8, 32], strides = [1, 1]} : vector<8x128xf32> to vector<8x32xf32>
    %223 = arith.mulf %216, %204 : vector<8x32xf32>
    %224 = arith.mulf %215, %221 : vector<8x32xf32>
    %225 = arith.addf %223, %224 : vector<8x32xf32>
    %226 = math.tanh %225 : vector<8x32xf32>
    %227 = arith.mulf %222, %226 : vector<8x32xf32>
    %228 = vector.extract_strided_slice %183 {offsets = [16, 0], sizes = [8, 128], strides = [1, 1]} : vector<64x128xf32> to vector<8x128xf32>
    %cst_58 = arith.constant dense<0.000000e+00> : vector<8x128xf32>
    %229 = tpu.matmul %227, %179, %cst_58 {dimension_numbers = #tpu.dot_dimension_numbers<[1], [0], [0], [1], [0, 0, 1, 1], [], []>} : vector<8x32xf32>, vector<32x128xf32>, vector<8x128xf32> -> vector<8x128xf32>
    %230 = arith.addf %228, %229 : vector<8x128xf32>
    %231 = arith.negf %230 : vector<8x128xf32>
    %232 = math.exp %231 : vector<8x128xf32>
    %cst_59 = arith.constant 1.000000e+00 : f32
    %233 = vector.broadcast %cst_59 : f32 to vector<8x128xf32>
    %234 = arith.addf %233, %232 : vector<8x128xf32>
    %235 = arith.divf %233, %234 : vector<8x128xf32>
    %236 = vector.extract_strided_slice %235 {offsets = [0, 0], sizes = [8, 32], strides = [1, 1]} : vector<8x128xf32> to vector<8x32xf32>
    %237 = vector.extract_strided_slice %235 {offsets = [0, 32], sizes = [8, 32], strides = [1, 1]} : vector<8x128xf32> to vector<8x32xf32>
    %238 = vector.extract_strided_slice %235 {offsets = [0, 64], sizes = [8, 32], strides = [1, 1]} : vector<8x128xf32> to vector<8x32xf32>
    %cst_60 = arith.constant 2.000000e+00 : f32
    %239 = vector.broadcast %cst_60 : f32 to vector<8x32xf32>
    %240 = arith.mulf %239, %238 : vector<8x32xf32>
    %cst_61 = arith.constant 1.000000e+00 : f32
    %241 = vector.broadcast %cst_61 : f32 to vector<8x32xf32>
    %242 = arith.subf %240, %241 : vector<8x32xf32>
    %243 = vector.extract_strided_slice %235 {offsets = [0, 96], sizes = [8, 32], strides = [1, 1]} : vector<8x128xf32> to vector<8x32xf32>
    %244 = arith.mulf %237, %225 : vector<8x32xf32>
    %245 = arith.mulf %236, %242 : vector<8x32xf32>
    %246 = arith.addf %244, %245 : vector<8x32xf32>
    %247 = math.tanh %246 : vector<8x32xf32>
    %248 = arith.mulf %243, %247 : vector<8x32xf32>
    %249 = vector.extract_strided_slice %183 {offsets = [24, 0], sizes = [8, 128], strides = [1, 1]} : vector<64x128xf32> to vector<8x128xf32>
    %cst_62 = arith.constant dense<0.000000e+00> : vector<8x128xf32>
    %250 = tpu.matmul %248, %179, %cst_62 {dimension_numbers = #tpu.dot_dimension_numbers<[1], [0], [0], [1], [0, 0, 1, 1], [], []>} : vector<8x32xf32>, vector<32x128xf32>, vector<8x128xf32> -> vector<8x128xf32>
    %251 = arith.addf %249, %250 : vector<8x128xf32>
    %252 = arith.negf %251 : vector<8x128xf32>
    %253 = math.exp %252 : vector<8x128xf32>
    %cst_63 = arith.constant 1.000000e+00 : f32
    %254 = vector.broadcast %cst_63 : f32 to vector<8x128xf32>
    %255 = arith.addf %254, %253 : vector<8x128xf32>
    %256 = arith.divf %254, %255 : vector<8x128xf32>
    %257 = vector.extract_strided_slice %256 {offsets = [0, 0], sizes = [8, 32], strides = [1, 1]} : vector<8x128xf32> to vector<8x32xf32>
    %258 = vector.extract_strided_slice %256 {offsets = [0, 32], sizes = [8, 32], strides = [1, 1]} : vector<8x128xf32> to vector<8x32xf32>
    %259 = vector.extract_strided_slice %256 {offsets = [0, 64], sizes = [8, 32], strides = [1, 1]} : vector<8x128xf32> to vector<8x32xf32>
    %cst_64 = arith.constant 2.000000e+00 : f32
    %260 = vector.broadcast %cst_64 : f32 to vector<8x32xf32>
    %261 = arith.mulf %260, %259 : vector<8x32xf32>
    %cst_65 = arith.constant 1.000000e+00 : f32
    %262 = vector.broadcast %cst_65 : f32 to vector<8x32xf32>
    %263 = arith.subf %261, %262 : vector<8x32xf32>
    %264 = vector.extract_strided_slice %256 {offsets = [0, 96], sizes = [8, 32], strides = [1, 1]} : vector<8x128xf32> to vector<8x32xf32>
    %265 = arith.mulf %258, %246 : vector<8x32xf32>
    %266 = arith.mulf %257, %263 : vector<8x32xf32>
    %267 = arith.addf %265, %266 : vector<8x32xf32>
    %268 = math.tanh %267 : vector<8x32xf32>
    %269 = arith.mulf %264, %268 : vector<8x32xf32>
    %270 = vector.extract_strided_slice %183 {offsets = [32, 0], sizes = [8, 128], strides = [1, 1]} : vector<64x128xf32> to vector<8x128xf32>
    %cst_66 = arith.constant dense<0.000000e+00> : vector<8x128xf32>
    %271 = tpu.matmul %269, %179, %cst_66 {dimension_numbers = #tpu.dot_dimension_numbers<[1], [0], [0], [1], [0, 0, 1, 1], [], []>} : vector<8x32xf32>, vector<32x128xf32>, vector<8x128xf32> -> vector<8x128xf32>
    %272 = arith.addf %270, %271 : vector<8x128xf32>
    %273 = arith.negf %272 : vector<8x128xf32>
    %274 = math.exp %273 : vector<8x128xf32>
    %cst_67 = arith.constant 1.000000e+00 : f32
    %275 = vector.broadcast %cst_67 : f32 to vector<8x128xf32>
    %276 = arith.addf %275, %274 : vector<8x128xf32>
    %277 = arith.divf %275, %276 : vector<8x128xf32>
    %278 = vector.extract_strided_slice %277 {offsets = [0, 0], sizes = [8, 32], strides = [1, 1]} : vector<8x128xf32> to vector<8x32xf32>
    %279 = vector.extract_strided_slice %277 {offsets = [0, 32], sizes = [8, 32], strides = [1, 1]} : vector<8x128xf32> to vector<8x32xf32>
    %280 = vector.extract_strided_slice %277 {offsets = [0, 64], sizes = [8, 32], strides = [1, 1]} : vector<8x128xf32> to vector<8x32xf32>
    %cst_68 = arith.constant 2.000000e+00 : f32
    %281 = vector.broadcast %cst_68 : f32 to vector<8x32xf32>
    %282 = arith.mulf %281, %280 : vector<8x32xf32>
    %cst_69 = arith.constant 1.000000e+00 : f32
    %283 = vector.broadcast %cst_69 : f32 to vector<8x32xf32>
    %284 = arith.subf %282, %283 : vector<8x32xf32>
    %285 = vector.extract_strided_slice %277 {offsets = [0, 96], sizes = [8, 32], strides = [1, 1]} : vector<8x128xf32> to vector<8x32xf32>
    %286 = arith.mulf %279, %267 : vector<8x32xf32>
    %287 = arith.mulf %278, %284 : vector<8x32xf32>
    %288 = arith.addf %286, %287 : vector<8x32xf32>
    %289 = math.tanh %288 : vector<8x32xf32>
    %290 = arith.mulf %285, %289 : vector<8x32xf32>
    %291 = vector.extract_strided_slice %183 {offsets = [40, 0], sizes = [8, 128], strides = [1, 1]} : vector<64x128xf32> to vector<8x128xf32>
    %cst_70 = arith.constant dense<0.000000e+00> : vector<8x128xf32>
    %292 = tpu.matmul %290, %179, %cst_70 {dimension_numbers = #tpu.dot_dimension_numbers<[1], [0], [0], [1], [0, 0, 1, 1], [], []>} : vector<8x32xf32>, vector<32x128xf32>, vector<8x128xf32> -> vector<8x128xf32>
    %293 = arith.addf %291, %292 : vector<8x128xf32>
    %294 = arith.negf %293 : vector<8x128xf32>
    %295 = math.exp %294 : vector<8x128xf32>
    %cst_71 = arith.constant 1.000000e+00 : f32
    %296 = vector.broadcast %cst_71 : f32 to vector<8x128xf32>
    %297 = arith.addf %296, %295 : vector<8x128xf32>
    %298 = arith.divf %296, %297 : vector<8x128xf32>
    %299 = vector.extract_strided_slice %298 {offsets = [0, 0], sizes = [8, 32], strides = [1, 1]} : vector<8x128xf32> to vector<8x32xf32>
    %300 = vector.extract_strided_slice %298 {offsets = [0, 32], sizes = [8, 32], strides = [1, 1]} : vector<8x128xf32> to vector<8x32xf32>
    %301 = vector.extract_strided_slice %298 {offsets = [0, 64], sizes = [8, 32], strides = [1, 1]} : vector<8x128xf32> to vector<8x32xf32>
    %cst_72 = arith.constant 2.000000e+00 : f32
    %302 = vector.broadcast %cst_72 : f32 to vector<8x32xf32>
    %303 = arith.mulf %302, %301 : vector<8x32xf32>
    %cst_73 = arith.constant 1.000000e+00 : f32
    %304 = vector.broadcast %cst_73 : f32 to vector<8x32xf32>
    %305 = arith.subf %303, %304 : vector<8x32xf32>
    %306 = vector.extract_strided_slice %298 {offsets = [0, 96], sizes = [8, 32], strides = [1, 1]} : vector<8x128xf32> to vector<8x32xf32>
    %307 = arith.mulf %300, %288 : vector<8x32xf32>
    %308 = arith.mulf %299, %305 : vector<8x32xf32>
    %309 = arith.addf %307, %308 : vector<8x32xf32>
    %310 = math.tanh %309 : vector<8x32xf32>
    %311 = arith.mulf %306, %310 : vector<8x32xf32>
    %312 = vector.extract_strided_slice %183 {offsets = [48, 0], sizes = [8, 128], strides = [1, 1]} : vector<64x128xf32> to vector<8x128xf32>
    %cst_74 = arith.constant dense<0.000000e+00> : vector<8x128xf32>
    %313 = tpu.matmul %311, %179, %cst_74 {dimension_numbers = #tpu.dot_dimension_numbers<[1], [0], [0], [1], [0, 0, 1, 1], [], []>} : vector<8x32xf32>, vector<32x128xf32>, vector<8x128xf32> -> vector<8x128xf32>
    %314 = arith.addf %312, %313 : vector<8x128xf32>
    %315 = arith.negf %314 : vector<8x128xf32>
    %316 = math.exp %315 : vector<8x128xf32>
    %cst_75 = arith.constant 1.000000e+00 : f32
    %317 = vector.broadcast %cst_75 : f32 to vector<8x128xf32>
    %318 = arith.addf %317, %316 : vector<8x128xf32>
    %319 = arith.divf %317, %318 : vector<8x128xf32>
    %320 = vector.extract_strided_slice %319 {offsets = [0, 0], sizes = [8, 32], strides = [1, 1]} : vector<8x128xf32> to vector<8x32xf32>
    %321 = vector.extract_strided_slice %319 {offsets = [0, 32], sizes = [8, 32], strides = [1, 1]} : vector<8x128xf32> to vector<8x32xf32>
    %322 = vector.extract_strided_slice %319 {offsets = [0, 64], sizes = [8, 32], strides = [1, 1]} : vector<8x128xf32> to vector<8x32xf32>
    %cst_76 = arith.constant 2.000000e+00 : f32
    %323 = vector.broadcast %cst_76 : f32 to vector<8x32xf32>
    %324 = arith.mulf %323, %322 : vector<8x32xf32>
    %cst_77 = arith.constant 1.000000e+00 : f32
    %325 = vector.broadcast %cst_77 : f32 to vector<8x32xf32>
    %326 = arith.subf %324, %325 : vector<8x32xf32>
    %327 = vector.extract_strided_slice %319 {offsets = [0, 96], sizes = [8, 32], strides = [1, 1]} : vector<8x128xf32> to vector<8x32xf32>
    %328 = arith.mulf %321, %309 : vector<8x32xf32>
    %329 = arith.mulf %320, %326 : vector<8x32xf32>
    %330 = arith.addf %328, %329 : vector<8x32xf32>
    %331 = math.tanh %330 : vector<8x32xf32>
    %332 = arith.mulf %327, %331 : vector<8x32xf32>
    %333 = vector.extract_strided_slice %183 {offsets = [56, 0], sizes = [8, 128], strides = [1, 1]} : vector<64x128xf32> to vector<8x128xf32>
    %cst_78 = arith.constant dense<0.000000e+00> : vector<8x128xf32>
    %334 = tpu.matmul %332, %179, %cst_78 {dimension_numbers = #tpu.dot_dimension_numbers<[1], [0], [0], [1], [0, 0, 1, 1], [], []>} : vector<8x32xf32>, vector<32x128xf32>, vector<8x128xf32> -> vector<8x128xf32>
    %335 = arith.addf %333, %334 : vector<8x128xf32>
    %336 = arith.negf %335 : vector<8x128xf32>
    %337 = math.exp %336 : vector<8x128xf32>
    %cst_79 = arith.constant 1.000000e+00 : f32
    %338 = vector.broadcast %cst_79 : f32 to vector<8x128xf32>
    %339 = arith.addf %338, %337 : vector<8x128xf32>
    %340 = arith.divf %338, %339 : vector<8x128xf32>
    %341 = vector.extract_strided_slice %340 {offsets = [0, 0], sizes = [8, 32], strides = [1, 1]} : vector<8x128xf32> to vector<8x32xf32>
    %342 = vector.extract_strided_slice %340 {offsets = [0, 32], sizes = [8, 32], strides = [1, 1]} : vector<8x128xf32> to vector<8x32xf32>
    %343 = vector.extract_strided_slice %340 {offsets = [0, 64], sizes = [8, 32], strides = [1, 1]} : vector<8x128xf32> to vector<8x32xf32>
    %cst_80 = arith.constant 2.000000e+00 : f32
    %344 = vector.broadcast %cst_80 : f32 to vector<8x32xf32>
    %345 = arith.mulf %344, %343 : vector<8x32xf32>
    %cst_81 = arith.constant 1.000000e+00 : f32
    %346 = vector.broadcast %cst_81 : f32 to vector<8x32xf32>
    %347 = arith.subf %345, %346 : vector<8x32xf32>
    %348 = vector.extract_strided_slice %340 {offsets = [0, 96], sizes = [8, 32], strides = [1, 1]} : vector<8x128xf32> to vector<8x32xf32>
    %349 = arith.mulf %342, %330 : vector<8x32xf32>
    %350 = arith.mulf %341, %347 : vector<8x32xf32>
    %351 = arith.addf %349, %350 : vector<8x32xf32>
    %352 = math.tanh %351 : vector<8x32xf32>
    %353 = arith.mulf %348, %352 : vector<8x32xf32>
    %c0_82 = arith.constant 0 : index
    %c0_83 = arith.constant 0 : index
    %354 = vector.load %arg8[%c0_82, %c0_83] : memref<32x4xf32, #tpu.memory_space<vmem>>, vector<32x4xf32>
    %cst_84 = arith.constant dense<0.000000e+00> : vector<8x4xf32>
    %355 = tpu.matmul %353, %354, %cst_84 {dimension_numbers = #tpu.dot_dimension_numbers<[1], [0], [0], [1], [0, 0, 1, 1], [], []>} : vector<8x32xf32>, vector<32x4xf32>, vector<8x4xf32> -> vector<8x4xf32>
    %c0_85 = arith.constant 0 : index
    %c0_86 = arith.constant 0 : index
    %356 = vector.load %arg9[%c0_85, %c0_86] : memref<1x4xf32, #tpu.memory_space<vmem>>, vector<1x4xf32>
    %357 = vector.broadcast %356 : vector<1x4xf32> to vector<8x4xf32>
    %358 = arith.addf %355, %357 : vector<8x4xf32>
    %c0_87 = arith.constant 0 : index
    %c0_88 = arith.constant 0 : index
    %359 = vector.load %arg10[%c0_87, %c0_88] : memref<8x4xf32, #tpu.memory_space<vmem>>, vector<8x4xf32>
    tpu.vector_store %arg10[%c0_87, %c0_88], %358 {strides = array<i32>} : memref<8x4xf32, #tpu.memory_space<vmem>>, vector<8x4xf32>,
    return
  }
  func.func @transform_0(%arg0: i32) -> (i32, i32) {
    %c0_i32 = arith.constant 0 : i32
    %c0_i32_0 = arith.constant 0 : i32
    %c0_i32_1 = arith.constant 0 : i32
    return %c0_i32, %c0_i32_0 : i32, i32
  }
  func.func @transform_1(%arg0: i32) -> (i32, i32) {
    %c0_i32 = arith.constant 0 : i32
    %c0_i32_0 = arith.constant 0 : i32
    %c0_i32_1 = arith.constant 0 : i32
    return %c0_i32, %c0_i32_0 : i32, i32
  }
  func.func @transform_2(%arg0: i32) -> (i32, i32) {
    %c0_i32 = arith.constant 0 : i32
    %c0_i32_0 = arith.constant 0 : i32
    %c0_i32_1 = arith.constant 0 : i32
    return %c0_i32, %c0_i32_0 : i32, i32
  }
  func.func @transform_3(%arg0: i32) -> (i32, i32) {
    %c0_i32 = arith.constant 0 : i32
    %c0_i32_0 = arith.constant 0 : i32
    %c0_i32_1 = arith.constant 0 : i32
    return %c0_i32, %c0_i32_0 : i32, i32
  }
  func.func @transform_4(%arg0: i32) -> (i32, i32) {
    %c0_i32 = arith.constant 0 : i32
    %c0_i32_0 = arith.constant 0 : i32
    %c0_i32_1 = arith.constant 0 : i32
    return %c0_i32, %c0_i32_0 : i32, i32
  }
  func.func @transform_5(%arg0: i32) -> (i32, i32) {
    %c0_i32 = arith.constant 0 : i32
    %c0_i32_0 = arith.constant 0 : i32
    %c0_i32_1 = arith.constant 0 : i32
    return %c0_i32, %c0_i32_0 : i32, i32
  }
  func.func @transform_6(%arg0: i32) -> (i32, i32) {
    %c0_i32 = arith.constant 0 : i32
    %c0_i32_0 = arith.constant 0 : i32
    %c0_i32_1 = arith.constant 0 : i32
    return %c0_i32, %c0_i32_0 : i32, i32
  }
  func.func @transform_7(%arg0: i32) -> (i32, i32) {
    %c0_i32 = arith.constant 0 : i32
    %c0_i32_0 = arith.constant 0 : i32
    %c0_i32_1 = arith.constant 0 : i32
    return %c0_i32, %c0_i32_0 : i32, i32
  }
  func.func @transform_8(%arg0: i32) -> (i32, i32) {
    %c0_i32 = arith.constant 0 : i32
    %c0_i32_0 = arith.constant 0 : i32
    %c0_i32_1 = arith.constant 0 : i32
    return %c0_i32, %c0_i32_0 : i32, i32
  }
  func.func @transform_9(%arg0: i32) -> (i32, i32) {
    %c0_i32 = arith.constant 0 : i32
    %c0_i32_0 = arith.constant 0 : i32
    %c0_i32_1 = arith.constant 0 : i32
    return %c0_i32, %c0_i32_0 : i32, i32
  }
}

</mosaic_0001>

<bundles_post_ra>
// kernel: tpu_custom_call.1
= control target key start
LH: loop header
LB: loop body
LE: loop exit
PB: predicated region body
PF: predicated region fallthrough
CT: control target
= control target key end

     0   :  { %vm77_vm0 = vcmask 1043456   ;;  %vm52_vm1 = vcmask 31744   ;;  %v2617_v0 = vmov 0.0|0.0   ;;  %vm2618_vm2 = vmmov 0   ;;  %s2620_s23 = smov 64   ;;  %s3040_s3 = inlined_call_operand.vmem [shape: f32[32,128], index: 3, kind: input, shape index: {}]   ;;  %s3041_s1 = inlined_call_operand.vmem [shape: f32[4,128], index: 1, kind: input, shape index: {}]   ;;  %s3042_s0 = inlined_call_operand.vmem [shape: f32[64,4], index: 0, kind: input, shape index: {}]   ;;  %s3043_s5 = inlined_call_operand.vmem [shape: f32[1,128], index: 5, kind: input, shape index: {}]   ;;  %s3044_s2 = inlined_call_operand.vmem [shape: f32[32,128], index: 2, kind: input, shape index: {}]   ;;  %s3045_s4 = inlined_call_operand.vmem [shape: f32[32,128], index: 4, kind: input, shape index: {}]   ;;  %s3046_s6 = inlined_call_operand.vmem [shape: f32[1,128], index: 6, kind: input, shape index: {}]   ;;  %s3047_s7 = inlined_call_operand.vmem [shape: f32[32,4], index: 7, kind: input, shape index: {}]   ;;  %s3048_s8 = inlined_call_operand.vmem [shape: f32[1,4], index: 8, kind: input, shape index: {}]   ;;  %s3049_s9 = inlined_call_operand.vmem [shape: f32[8,4], index: 9, kind: output, shape index: {}]  }
   0x1   :  { %2406 = vmatprep.subr.bf16.mxu1 %v2617_v0  ;;  %v41_v1 = vld [vmem:[%s3040_s3] sm:$0xff]  ;;  %v42_v2 = vld [vmem:[%s3040_s3 + $0x8] sm:$0xff]  ;;  %v43_v7 = vld [vmem:[%s3040_s3 + $0x10] sm:$0xff]  ;;  %v2619_v8 = vmov 0.0   ;;  %vm186_vm3 = vcmask 261120  }
   0x2   :  { %v40_v3 = vld [vmem:[%s3041_s1] sm:$0xf]  ;;  %v2682_v4 = vpack.c.bf16 %v42_v2, %v41_v1  ;;  %v33_v6 = vld [vmem:[%s3042_s0 + $0x8] sm:$0xff]  ;;  %2207 = vmatprep.mubr.msk.f32.mxu1 %vm2618_vm2, %v2619_v8  ;;  %v44_v9 = vld [vmem:[%s3040_s3 + $0x18] sm:$0xff] }
   0x3   :  { %2185 = vmatprep.subr.msk.mxu0 %vm77_vm0, %v40_v3  ;;  %v32_v5 = vld [vmem:[%s3042_s0] sm:$0xff]  ;;  %v2703_v10 = vpack.c.bf16 %v44_v9, %v43_v7  ;;  %v34_v48 = vld [vmem:[%s3042_s0 + $0x10] sm:$0xff]  ;;  %v35_v49 = vld [vmem:[%s3042_s0 + $0x18] sm:$0xff] }
   0x4   :  { %2186 = vmatpush3.msk.msra.mxu0 %vm77_vm0, %v40_v3  ;;  %2187 = vmatprep.mubr.msk.f32.mxu0 %vm52_vm1, %v32_v5  ;;  %v2723_v12 = vld [vmem:[%s3043_s5] ss:$0 sm:$0xff]  ;;  %s2621_s5 = smov 32   ;;  %v37_v51 = vld [vmem:[%s3042_s0 + $0x28] sm:$0xff]  ;;  %v38_v52 = vld [vmem:[%s3042_s0 + $0x30] sm:$0xff] }
   0x5   :  { %2408 = vmatpush3.bf16.msra.mxu1 %v2682_v4  ;;  %2188 = vmatmul.mubr.msk.f32.vlgmr.msra.gmra.mrb[0].mxu0 %vm52_vm1, %v33_v6  ;;  %v36_v50 = vld [vmem:[%s3042_s0 + $0x20] sm:$0xff]  ;;  %v39_v53 = vld [vmem:[%s3042_s0 + $0x38] sm:$0xff] }
   0x6   :  { %2409 = vmatprep.subr.bf16.mxu1 %v2617_v0  ;;  %2418 = vmatprep.subr.bf16.mxu0 %v2617_v0 }
   0x7   :  { %2420 = vmatpush3.bf16.msra.mxu0 %v2682_v4  ;;  %2190 = vmatprep.mubr.msk.f32.mxu0 %vm52_vm1, %v34_v48 }
   0x8   :  { %2421 = vmatprep.subr.bf16.mxu0 %v2617_v0 }
   0x9   :  { %2411 = vmatpush3.bf16.msra.mxu1 %v2703_v10  ;;  %2191 = vmatmul.mubr.msk.f32.gmra.mrb[2].mxu0 %vm52_vm1, %v35_v49 }
   0xa   :  { %2412 = vmatprep.subr.bf16.mxu1 %v2617_v0  ;;  %2193 = vmatprep.mubr.msk.f32.mxu0 %vm52_vm1, %v36_v50 }
   0xb   :  { %2423 = vmatpush3.bf16.msra.mxu0 %v2703_v10 }
   0xc   :  { %2208 = vmatmul.mubr.f32.vlgmr.msra.gmra.mrb[0].mxu1 %v2619_v8  ;;  %2430 = vmatprep.subr.bf16.mxu0 %v2617_v0 }
   0xd   :  { %2414 = vmatpush3.bf16.msra.mxu1 %v2682_v4  ;;  %2218 = vmatprep.mubr.msk.f32.mxu1 %vm2618_vm2, %v2619_v8 }
   0xe   :  { %2415 = vmatprep.subr.bf16.mxu1 %v2617_v0  ;;  %2194 = vmatmul.mubr.msk.f32.gmra.mrb[4].mxu0 %vm52_vm1, %v37_v51 }
   0xf   :  { %2196 = vmatprep.mubr.msk.f32.mxu0 %vm52_vm1, %v38_v52 }
  0x11   :  { %2417 = vmatpush3.bf16.msra.mxu1 %v2703_v10 }
  0x12   :  { %2424 = vmatprep.subr.bf16.mxu1 %v2617_v0  ;;  %2197 = vmatmul.mubr.msk.f32.gmra.mrb[6].mxu0 %vm52_vm1, %v39_v53 }
  0x13   :  { %2229 = vmatprep.mubr.msk.f32.mxu0 %vm2618_vm2, %v2619_v8 }
  0xd8   :  { %v2189_v11 = vpop.f32.mrb[0].mxu0 }
  0xd9   :  { %v147_v13 = vpop.f32.mrb[1].mxu0  ;;  %v153_v33 = vadd.f32 %v2189_v11, %v2723_v12 }
  0xda   :  { %v148_v14 = vadd.f32 %v2723_v12, %v147_v13 }
  0xdc   :  { %v2192_v57 = vpop.f32.mrb[2].mxu0 }
  0xdd   :  { %v157_v58 = vpop.f32.mrb[3].mxu0 }
  0xde   :  { %v158_v1 = vadd.f32 %v2723_v12, %v157_v58 }
  0xdf   :  { %v256_v15 = vpop.f32.mrb[0].mxu1 }
  0xe0   :  { %v260_v16 = vadd.f32 %v256_v15, %v148_v14  ;;  %v2209_v17 = vpop.f32.mrb[1].mxu1 }
  0xe1   :  { %v2771_v59 = vpop.f32.mrb[4].mxu0 }
  0xe2   :  { %v2022_v18 = vmul.f32 -1.442695, %v260_v16  ;;  %v2773_v60 = vpop.f32.mrb[5].mxu0 }
  0xe4   :  { %2521 = vpow2.f32 %v2022_v18 }
  0xe5   :  { %v2775_v61 = vpop.f32.mrb[6].mxu0 }
  0xe6   :  { %v2777_v62 = vpop.f32.mrb[7].mxu0 }
  0xee   :  { %v2522_v19 = vpop.eup %2521 }
  0xef   :  { %v264_v20 = vadd.f32 1.0, %v2522_v19 }
  0xf1   :  { %2523 = vrcp.f32 %v264_v20 }
  0xfb   :  { %v2524_v21 = vpop.eup %2523 }
  0xfc   :  { %v267_v22 = vmul.f32 2.0, %v2524_v21  ;;  %v269_v26 = vmul.f32 0.0, %v2524_v21 }
  0xfe   :  { %v2023_v23 = vadd.f32 -1.0, %v267_v22 }
 0x100   :  { %271 = vrot.lane.b32.xlu0 %v2023_v23, %s2620_s23 }
 0x172   :  { %v272_v24 = vpop.permute.xlu0 %271 }
 0x173   :  { %v274_v25 = vmul.f32 %v2524_v21, %v272_v24  ;;  %v163_v24 = vadd.f32 %v2192_v57, %v2723_v12 }
 0x175   :  { %276 = vrot.lane.b32.xlu0 %v274_v25, %s2621_s5 }
 0x1e7   :  { %v277_v27 = vpop.permute.xlu0 %276 }
 0x1e8   :  { %v279_v28 = vadd.f32 %v277_v27, %v269_v26 }
 0x1ea   :  { %2525 = vtanh.f32 %v279_v28 }
 0x1f4   :  { %v2526_v29 = vpop.eup %2525 }
 0x1f5   :  { %282 = vrot.lane.b32.xlu1 %v2526_v29, %s2620_s23 }
 0x267   :  { %v283_v30 = vpop.permute.xlu1 %282 }
 0x268   :  { %v285_v31 = vmul.f32 %v2524_v21, %v283_v30 }
 0x26a   :  { %287 = vrot.lane.b32.xlu1 %v285_v31, %s2621_s5 }
 0x2dc   :  { %v2730_v32 = vpop.permute.xlu1 %287 }
 0x2dd   :  { %2219 = vmatmul.mubr.msk.f32.vlgmr.msra.gmra.mrb[2].mxu1 %vm186_vm3, %v2730_v32 }
 0x2de   :  { %2426 = vmatpush3.bf16.msra.mxu1 %v2682_v4  ;;  %2240 = vmatprep.mubr.msk.f32.mxu1 %vm2618_vm2, %v2619_v8 }
 0x2df   :  { %2427 = vmatprep.subr.bf16.mxu1 %v2617_v0 }
 0x2e2   :  { %2429 = vmatpush3.bf16.msra.mxu1 %v2703_v10 }
 0x2e3   :  { %2436 = vmatprep.subr.bf16.mxu1 %v2617_v0 }
 0x3b0   :  { %v357_v34 = vpop.f32.mrb[2].mxu1 }
 0x3b1   :  { %v361_v35 = vadd.f32 %v357_v34, %v153_v33  ;;  %v2220_v36 = vpop.f32.mrb[3].mxu1 }
 0x3b3   :  { %v2025_v37 = vmul.f32 -1.442695, %v361_v35 }
 0x3b5   :  { %2527 = vpow2.f32 %v2025_v37 }
 0x3bf   :  { %v2528_v38 = vpop.eup %2527 }
 0x3c0   :  { %v365_v39 = vadd.f32 1.0, %v2528_v38 }
 0x3c2   :  { %2529 = vrcp.f32 %v365_v39 }
 0x3cc   :  { %v2530_v40 = vpop.eup %2529 }
 0x3cd   :  { %v368_v41 = vmul.f32 2.0, %v2530_v40  ;;  %v370_v45 = vmul.f32 %v2530_v40, %v279_v28 }
 0x3cf   :  { %v2026_v42 = vadd.f32 -1.0, %v368_v41 }
 0x3d1   :  { %372 = vrot.lane.b32.xlu0 %v2026_v42, %s2620_s23 }
 0x443   :  { %v373_v43 = vpop.permute.xlu0 %372 }
 0x444   :  { %v375_v44 = vmul.f32 %v2530_v40, %v373_v43 }
 0x446   :  { %377 = vrot.lane.b32.xlu1 %v375_v44, %s2621_s5  ;;  %v168_v44 = vadd.f32 %v2723_v12, %v2773_v60 }
 0x4b8   :  { %v378_v46 = vpop.permute.xlu1 %377 }
 0x4b9   :  { %v380_v47 = vadd.f32 %v378_v46, %v370_v45 }
 0x4bb   :  { %2531 = vtanh.f32 %v380_v47 }
 0x4c5   :  { %v2532_v54 = vpop.eup %2531 }
 0x4c6   :  { %383 = vrot.lane.b32.xlu0 %v2532_v54, %s2620_s23 }
 0x538   :  { %v384_v55 = vpop.permute.xlu0 %383 }
 0x539   :  { %v386_v56 = vmul.f32 %v2530_v40, %v384_v55 }
 0x53b   :  { %388 = vrot.lane.b32.xlu1 %v386_v56, %s2621_s5 }
 0x5ad   :  { %v2779_v63 = vpop.permute.xlu1 %388 }
 0x5ae   :  { %2230 = vmatmul.mubr.msk.f32.vlgmr.msra.gmra.mrb[8].mxu0 %vm186_vm3, %v2779_v63 }
 0x5af   :  { %2432 = vmatpush3.bf16.msra.mxu0 %v2682_v4  ;;  %2251 = vmatprep.mubr.msk.f32.mxu0 %vm2618_vm2, %v2619_v8 }
 0x5b0   :  { %2433 = vmatprep.subr.bf16.mxu0 %v2617_v0 }
 0x5b3   :  { %2435 = vmatpush3.bf16.msra.mxu0 %v2703_v10 }
 0x5b4   :  { %2442 = vmatprep.subr.bf16.mxu0 %v2617_v0 }
 0x681   :  { %v458_v2 = vpop.f32.mrb[8].mxu0 }
 0x682   :  { %v462_v3 = vadd.f32 %v458_v2, %v158_v1  ;;  %v2231_v5 = vpop.f32.mrb[9].mxu0 }
 0x683   :  { %v173_v5 = vadd.f32 %v2771_v59, %v2723_v12 }
 0x684   :  { %v2028_v6 = vmul.f32 -1.442695, %v462_v3 }
 0x686   :  { %2533 = vpow2.f32 %v2028_v6 }
 0x690   :  { %v2534_v7 = vpop.eup %2533 }
 0x691   :  { %v466_v9 = vadd.f32 1.0, %v2534_v7 }
 0x693   :  { %2535 = vrcp.f32 %v466_v9 }
 0x69d   :  { %v2536_v11 = vpop.eup %2535 }
 0x69e   :  { %v469_v13 = vmul.f32 2.0, %v2536_v11  ;;  %v471_v17 = vmul.f32 %v2536_v11, %v380_v47 }
 0x6a0   :  { %v2029_v14 = vadd.f32 -1.0, %v469_v13 }
 0x6a2   :  { %473 = vrot.lane.b32.xlu0 %v2029_v14, %s2620_s23 }
 0x714   :  { %v474_v15 = vpop.permute.xlu0 %473 }
 0x715   :  { %v476_v16 = vmul.f32 %v2536_v11, %v474_v15 }
 0x717   :  { %478 = vrot.lane.b32.xlu1 %v476_v16, %s2621_s5 }
 0x789   :  { %v479_v18 = vpop.permute.xlu1 %478 }
 0x78a   :  { %v481_v19 = vadd.f32 %v479_v18, %v471_v17 }
 0x78c   :  { %2537 = vtanh.f32 %v481_v19 }
 0x796   :  { %v2538_v20 = vpop.eup %2537 }
 0x797   :  { %484 = vrot.lane.b32.xlu0 %v2538_v20, %s2620_s23  ;;  %v993_v20 = vld [vmem:[%s3044_s2] sm:$0xff] }
 0x809   :  { %v485_v21 = vpop.permute.xlu0 %484 }
 0x80a   :  { %v487_v22 = vmul.f32 %v2536_v11, %v485_v21  ;;  %v994_v21 = vld [vmem:[%s3044_s2 + $0x8] sm:$0xff] }
 0x80c   :  { %489 = vrot.lane.b32.xlu1 %v487_v22, %s2621_s5  ;;  %v2454_v22 = vpack.c.bf16 %v994_v21, %v993_v20 }
 0x87e   :  { %v2794_v23 = vpop.permute.xlu1 %489 }
 0x87f   :  { %2241 = vmatmul.mubr.msk.f32.vlgmr.msra.gmra.mrb[4].mxu1 %vm186_vm3, %v2794_v23 }
 0x880   :  { %2438 = vmatpush3.bf16.msra.mxu1 %v2682_v4  ;;  %2262 = vmatprep.mubr.msk.f32.mxu1 %vm2618_vm2, %v2619_v8 }
 0x881   :  { %2439 = vmatprep.subr.bf16.mxu1 %v2617_v0 }
 0x884   :  { %2441 = vmatpush3.bf16.msra.mxu1 %v2703_v10 }
 0x885   :  { %2448 = vmatprep.subr.bf16.mxu1 %v2617_v0 }
 0x952   :  { %v559_v25 = vpop.f32.mrb[4].mxu1 }
 0x953   :  { %v563_v26 = vadd.f32 %v559_v25, %v163_v24  ;;  %v2242_v27 = vpop.f32.mrb[5].mxu1 }
 0x954   :  { %v995_v27 = vld [vmem:[%s3044_s2 + $0x10] sm:$0xff] }
 0x955   :  { %v2031_v28 = vmul.f32 -1.442695, %v563_v26 }
 0x957   :  { %2539 = vpow2.f32 %v2031_v28  ;;  %v996_v28 = vld [vmem:[%s3044_s2 + $0x18] sm:$0xff] }
 0x961   :  { %v2540_v29 = vpop.eup %2539 }
 0x962   :  { %v567_v30 = vadd.f32 1.0, %v2540_v29  ;;  %v2458_v29 = vpack.c.bf16 %v996_v28, %v995_v27 }
 0x964   :  { %2541 = vrcp.f32 %v567_v30 }
 0x96e   :  { %v2542_v31 = vpop.eup %2541 }
 0x96f   :  { %v570_v33 = vmul.f32 2.0, %v2542_v31  ;;  %v572_v37 = vmul.f32 %v2542_v31, %v481_v19 }
 0x971   :  { %v2032_v34 = vadd.f32 -1.0, %v570_v33 }
 0x973   :  { %574 = vrot.lane.b32.xlu0 %v2032_v34, %s2620_s23 }
 0x9e5   :  { %v575_v35 = vpop.permute.xlu0 %574 }
 0x9e6   :  { %v577_v36 = vmul.f32 %v2542_v31, %v575_v35 }
 0x9e8   :  { %579 = vrot.lane.b32.xlu1 %v577_v36, %s2621_s5 }
 0xa5a   :  { %v580_v38 = vpop.permute.xlu1 %579 }
 0xa5b   :  { %v582_v39 = vadd.f32 %v580_v38, %v572_v37 }
 0xa5d   :  { %2543 = vtanh.f32 %v582_v39 }
 0xa67   :  { %v2544_v40 = vpop.eup %2543 }
 0xa68   :  { %585 = vrot.lane.b32.xlu0 %v2544_v40, %s2620_s23 }
 0xada   :  { %v586_v41 = vpop.permute.xlu0 %585 }
 0xadb   :  { %v588_v42 = vmul.f32 %v2542_v31, %v586_v41 }
 0xadd   :  { %590 = vrot.lane.b32.xlu1 %v588_v42, %s2621_s5 }
 0xb4f   :  { %v2809_v43 = vpop.permute.xlu1 %590 }
 0xb50   :  { %2252 = vmatmul.mubr.msk.f32.vlgmr.msra.gmra.mrb[10].mxu0 %vm186_vm3, %v2809_v43 }
 0xb51   :  { %2444 = vmatpush3.bf16.msra.mxu0 %v2682_v4  ;;  %2273 = vmatprep.mubr.msk.f32.mxu0 %vm2618_vm2, %v2619_v8 }
 0xb52   :  { %2445 = vmatprep.subr.bf16.mxu0 %v2617_v0 }
 0xb55   :  { %2447 = vmatpush3.bf16.msra.mxu0 %v2703_v10 }
 0xb56   :  { %2455 = vmatprep.subr.bf16.mxu0 %v2454_v22 }
 0xc23   :  { %v660_v45 = vpop.f32.mrb[10].mxu0 }
 0xc24   :  { %v664_v46 = vadd.f32 %v660_v45, %v168_v44  ;;  %v2253_v47 = vpop.f32.mrb[11].mxu0 }
 0xc26   :  { %v2034_v48 = vmul.f32 -1.442695, %v664_v46 }
 0xc28   :  { %2545 = vpow2.f32 %v2034_v48 }
 0xc32   :  { %v2546_v49 = vpop.eup %2545 }
 0xc33   :  { %v668_v50 = vadd.f32 1.0, %v2546_v49 }
 0xc35   :  { %2547 = vrcp.f32 %v668_v50  ;;  %v997_v50 = vld [vmem:[%s3045_s4] sm:$0xff] }
 0xc3f   :  { %v2548_v51 = vpop.eup %2547 }
 0xc40   :  { %v671_v52 = vmul.f32 2.0, %v2548_v51  ;;  %v673_v56 = vmul.f32 %v2548_v51, %v582_v39 }
 0xc42   :  { %v2035_v53 = vadd.f32 -1.0, %v671_v52 }
 0xc44   :  { %675 = vrot.lane.b32.xlu0 %v2035_v53, %s2620_s23  ;;  %v999_v53 = vld [vmem:[%s3045_s4 + $0x10] sm:$0xff] }
 0xcb6   :  { %v676_v54 = vpop.permute.xlu0 %675 }
 0xcb7   :  { %v678_v55 = vmul.f32 %v2548_v51, %v676_v54  ;;  %v1000_v54 = vld [vmem:[%s3045_s4 + $0x18] sm:$0xff] }
 0xcb9   :  { %680 = vrot.lane.b32.xlu1 %v678_v55, %s2621_s5  ;;  %v2895_v55 = vpack.c.bf16 %v1000_v54, %v999_v53 }
 0xd2b   :  { %v681_v57 = vpop.permute.xlu1 %680 }
 0xd2c   :  { %v683_v58 = vadd.f32 %v681_v57, %v673_v56 }
 0xd2e   :  { %2549 = vtanh.f32 %v683_v58 }
 0xd38   :  { %v2550_v60 = vpop.eup %2549 }
 0xd39   :  { %686 = vrot.lane.b32.xlu0 %v2550_v60, %s2620_s23  ;;  %v183_v60 = vadd.f32 %v2775_v61, %v2723_v12 }
 0xdab   :  { %v687_v1 = vpop.permute.xlu0 %686 }
 0xdac   :  { %v689_v2 = vmul.f32 %v2548_v51, %v687_v1  ;;  %v998_v51 = vld [vmem:[%s3045_s4 + $0x8] sm:$0xff] }
 0xdad   :  { %v2885_v52 = vpack.c.bf16 %v998_v51, %v997_v50 }
 0xdae   :  { %691 = vrot.lane.b32.xlu1 %v689_v2, %s2621_s5 }
 0xe20   :  { %v692_v3 = vpop.permute.xlu1 %691 }
 0xe21   :  { %2263 = vmatmul.mubr.msk.f32.vlgmr.msra.gmra.mrb[6].mxu1 %vm186_vm3, %v692_v3 }
 0xe22   :  { %2450 = vmatpush3.bf16.msra.mxu1 %v2682_v4  ;;  %2284 = vmatprep.mubr.msk.f32.mxu1 %vm2618_vm2, %v2619_v8 }
 0xe23   :  { %2451 = vmatprep.subr.bf16.mxu1 %v2617_v0 }
 0xe26   :  { %2453 = vmatpush3.bf16.msra.mxu1 %v2703_v10 }
 0xe27   :  { %2462 = vmatprep.subr.bf16.mxu1 %v2617_v0 }
 0xef4   :  { %v761_v6 = vpop.f32.mrb[6].mxu1 }
 0xef5   :  { %v765_v7 = vadd.f32 %v761_v6, %v173_v5  ;;  %v2264_v9 = vpop.f32.mrb[7].mxu1  ;;  %v2920_v5 = vld [vmem:[%s3046_s6] ss:$0 sm:$0xff] }
 0xef7   :  { %v2037_v11 = vmul.f32 -1.442695, %v765_v7 }
 0xef9   :  { %2551 = vpow2.f32 %v2037_v11 }
 0xf03   :  { %v2552_v13 = vpop.eup %2551 }
 0xf04   :  { %v769_v14 = vadd.f32 1.0, %v2552_v13 }
 0xf06   :  { %2553 = vrcp.f32 %v769_v14 }
 0xf10   :  { %v2554_v4 = vpop.eup %2553 }
 0xf11   :  { %v772_v15 = vmul.f32 2.0, %v2554_v4  ;;  %v774_v18 = vmul.f32 %v2554_v4, %v683_v58 }
 0xf13   :  { %v2038_v16 = vadd.f32 -1.0, %v772_v15 }
 0xf15   :  { %776 = vrot.lane.b32.xlu0 %v2038_v16, %s2620_s23 }
 0xf87   :  { %v777_v17 = vpop.permute.xlu0 %776 }
 0xf88   :  { %v779_v10 = vmul.f32 %v2554_v4, %v777_v17 }
 0xf8a   :  { %781 = vrot.lane.b32.xlu1 %v779_v10, %s2621_s5 }
 0xffc   :  { %v782_v19 = vpop.permute.xlu1 %781 }
 0xffd   :  { %v784_v59 = vadd.f32 %v782_v19, %v774_v18 }
 0xfff   :  { %2555 = vtanh.f32 %v784_v59 }
0x1009   :  { %v2556_v24 = vpop.eup %2555 }
0x100a   :  { %787 = vrot.lane.b32.xlu0 %v2556_v24, %s2620_s23 }
0x107c   :  { %v788_v25 = vpop.permute.xlu0 %787 }
0x107d   :  { %v790_v26 = vmul.f32 %v2554_v4, %v788_v25 }
0x107f   :  { %792 = vrot.lane.b32.xlu1 %v790_v26, %s2621_s5 }
0x10f1   :  { %v793_v30 = vpop.permute.xlu1 %792 }
0x10f2   :  { %2274 = vmatmul.mubr.msk.f32.vlgmr.msra.gmra.mrb[12].mxu0 %vm186_vm3, %v793_v30 }
0x10f3   :  { %2457 = vmatpush3.bf16.msra.mxu0 %v2454_v22  ;;  %2295 = vmatprep.mubr.msk.f32.mxu0 %vm186_vm3, %v2730_v32  ;;  %v178_v32 = vadd.f32 %v2723_v12, %v2777_v62 }
0x10f4   :  { %2459 = vmatprep.subr.bf16.mxu0 %v2458_v29 }
0x10f7   :  { %2461 = vmatpush3.bf16.msra.mxu0 %v2458_v29 }
0x10f8   :  { %2474 = vmatprep.subr.bf16.mxu0 %v2617_v0 }
0x10fa   :  { %2296 = vmatmul.mubr.msk.f32.vlgmr.msra.gmra.mrb[14].mxu0 %vm186_vm3, %v2779_v63 }
0x10fb   :  { %2298 = vmatprep.mubr.msk.f32.mxu0 %vm186_vm3, %v2794_v23  ;;  %2476 = vmatpush3.bf16.msra.mxu0 %v2885_v52 }
0x10fc   :  { %2477 = vmatprep.subr.bf16.mxu0 %v2617_v0 }
0x10fe   :  { %2299 = vmatmul.mubr.msk.f32.gmra.mrb[16].mxu0 %vm186_vm3, %v2809_v43 }
0x10ff   :  { %2301 = vmatprep.mubr.msk.f32.mxu0 %vm186_vm3, %v692_v3  ;;  %2479 = vmatpush3.bf16.msra.mxu0 %v2895_v55 }
0x1100   :  { %2486 = vmatprep.subr.bf16.mxu0 %v2617_v0 }
0x1102   :  { %2302 = vmatmul.mubr.msk.f32.gmra.mrb[18].mxu0 %vm186_vm3, %v793_v30 }
0x11c5   :  { %v862_v31 = vpop.f32.mrb[12].mxu0 }
0x11c6   :  { %v866_v33 = vadd.f32 %v862_v31, %v178_v32  ;;  %v2275_v34 = vpop.f32.mrb[13].mxu0 }
0x11c8   :  { %v2040_v35 = vmul.f32 -1.442695, %v866_v33 }
0x11ca   :  { %2557 = vpow2.f32 %v2040_v35 }
0x11cd   :  { %v2863_v36 = vpop.f32.mrb[14].mxu0 }
0x11ce   :  { %v1079_v63 = vpop.f32.mrb[15].mxu0 }
0x11cf   :  { %v1080_v6 = vadd.f32 %v2920_v5, %v1079_v63 }
0x11d1   :  { %v2865_v37 = vpop.f32.mrb[16].mxu0 }
0x11d2   :  { %v2867_v23 = vpop.f32.mrb[17].mxu0 }
0x11d4   :  { %v2558_v38 = vpop.eup %2557 }
0x11d5   :  { %v870_v39 = vadd.f32 1.0, %v2558_v38  ;;  %v2869_v40 = vpop.f32.mrb[18].mxu0 }
0x11d6   :  { %v2871_v41 = vpop.f32.mrb[19].mxu0 }
0x11d7   :  { %2559 = vrcp.f32 %v870_v39  ;;  %v1085_v39 = vadd.f32 %v2863_v36, %v2920_v5 }
0x11e1   :  { %v2560_v62 = vpop.eup %2559 }
0x11e2   :  { %v873_v42 = vmul.f32 2.0, %v2560_v62  ;;  %v875_v46 = vmul.f32 %v2560_v62, %v784_v59 }
0x11e4   :  { %v2041_v43 = vadd.f32 -1.0, %v873_v42 }
0x11e6   :  { %877 = vrot.lane.b32.xlu0 %v2041_v43, %s2620_s23 }
0x1258   :  { %v878_v44 = vpop.permute.xlu0 %877 }
0x1259   :  { %v880_v45 = vmul.f32 %v2560_v62, %v878_v44 }
0x125b   :  { %882 = vrot.lane.b32.xlu1 %v880_v45, %s2621_s5 }
0x12cd   :  { %v883_v47 = vpop.permute.xlu1 %882 }
0x12ce   :  { %v2875_v48 = vadd.f32 %v883_v47, %v875_v46 }
0x12d0   :  { %2561 = vtanh.f32 %v2875_v48 }
0x12da   :  { %v2562_v49 = vpop.eup %2561 }
0x12db   :  { %888 = vrot.lane.b32.xlu0 %v2562_v49, %s2620_s23 }
0x134d   :  { %v889_v56 = vpop.permute.xlu0 %888 }
0x134e   :  { %v891_v57 = vmul.f32 %v2560_v62, %v889_v56 }
0x1350   :  { %893 = vrot.lane.b32.xlu1 %v891_v57, %s2621_s5 }
0x13c2   :  { %v894_v58 = vpop.permute.xlu1 %893 }
0x13c3   :  { %2285 = vmatmul.mubr.msk.f32.vlgmr.msra.gmra.mrb[8].mxu1 %vm186_vm3, %v894_v58  ;;  %2304 = vmatprep.mubr.msk.f32.mxu0 %vm186_vm3, %v894_v58 }
0x13c4   :  { %2464 = vmatpush3.bf16.msra.mxu1 %v2885_v52  ;;  %2315 = vmatprep.mubr.msk.f32.mxu1 %vm2618_vm2, %v2619_v8 }
0x13c5   :  { %2465 = vmatprep.subr.bf16.mxu1 %v2617_v0 }
0x13c8   :  { %2467 = vmatpush3.bf16.msra.mxu1 %v2895_v55 }
0x13c9   :  { %2468 = vmatprep.subr.bf16.mxu1 %v2617_v0 }
0x13cb   :  { %2316 = vmatmul.mubr.f32.vlgmr.msra.gmra.mrb[10].mxu1 %v2619_v8 }
0x13cc   :  { %2470 = vmatpush3.bf16.msra.mxu1 %v2885_v52  ;;  %2326 = vmatprep.mubr.msk.f32.mxu1 %vm2618_vm2, %v2619_v8 }
0x13cd   :  { %2471 = vmatprep.subr.bf16.mxu1 %v2617_v0 }
0x13d0   :  { %2473 = vmatpush3.bf16.msra.mxu1 %v2895_v55 }
0x13d1   :  { %2480 = vmatprep.subr.bf16.mxu1 %v2617_v0 }
0x1496   :  { %v963_v1 = vpop.f32.mrb[8].mxu1 }
0x1497   :  { %v967_v2 = vadd.f32 %v963_v1, %v183_v60  ;;  %v2286_v3 = vpop.f32.mrb[9].mxu1 }
0x1499   :  { %v2043_v10 = vmul.f32 -1.442695, %v967_v2 }
0x149e   :  { %v1184_v7 = vpop.f32.mrb[10].mxu1 }
0x149f   :  { %v1188_v9 = vadd.f32 %v1184_v7, %v1080_v6  ;;  %v2317_v11 = vpop.f32.mrb[11].mxu1  ;;  %v1090_v6 = vadd.f32 %v2920_v5, %v2867_v23 }
0x14a1   :  { %v2054_v13 = vmul.f32 -1.442695, %v1188_v9 }
0x14a3   :  { %2563 = vpow2.f32 %v2054_v13 }
0x14ad   :  { %v2564_v14 = vpop.eup %2563 }
0x14ae   :  { %v1192_v4 = vadd.f32 1.0, %v2564_v14 }
0x14b0   :  { %2565 = vrcp.f32 %v1192_v4 }
0x14b1   :  { %2567 = vpow2.f32 %v2043_v10 }
0x14ba   :  { %v2566_v15 = vpop.eup %2565 }
0x14bb   :  { %v1195_v12 = vmul.f32 2.0, %v2566_v15  ;;  %v2568_v18 = vpop.eup %2567  ;;  %v1197_v59 = vmul.f32 0.0, %v2566_v15 }
0x14bc   :  { %v971_v19 = vadd.f32 1.0, %v2568_v18 }
0x14bd   :  { %v2055_v61 = vadd.f32 -1.0, %v1195_v12 }
0x14be   :  { %2569 = vrcp.f32 %v971_v19 }
0x14bf   :  { %1199 = vrot.lane.b32.xlu0 %v2055_v61, %s2620_s23 }
0x14c8   :  { %v2570_v22 = vpop.eup %2569 }
0x14c9   :  { %v974_v24 = vmul.f32 2.0, %v2570_v22  ;;  %v976_v31 = vmul.f32 %v2570_v22, %v2875_v48 }
0x14cb   :  { %v2044_v26 = vadd.f32 -1.0, %v974_v24 }
0x1531   :  { %v1200_v16 = vpop.permute.xlu0 %1199 }
0x1532   :  { %v1202_v17 = vmul.f32 %v2566_v15, %v1200_v16 }
0x1534   :  { %1204 = vrot.lane.b32.xlu1 %v1202_v17, %s2621_s5 }
0x15a6   :  { %v1205_v20 = vpop.permute.xlu1 %1204 }
0x15a7   :  { %v1207_v21 = vadd.f32 %v1205_v20, %v1197_v59 }
0x15a9   :  { %2571 = vtanh.f32 %v1207_v21 }
0x15b3   :  { %v2572_v25 = vpop.eup %2571 }
0x15b4   :  { %1210 = vrot.lane.b32.xlu0 %v2572_v25, %s2620_s23 }
0x15b8   :  { %978 = vrot.lane.b32.xlu0 %v2044_v26, %s2620_s23 }
0x1626   :  { %v1211_v27 = vpop.permute.xlu0 %1210 }
0x1627   :  { %v1213_v28 = vmul.f32 %v2566_v15, %v1211_v27 }
0x1629   :  { %1215 = vrot.lane.b32.xlu1 %v1213_v28, %s2621_s5 }
0x162a   :  { %v979_v29 = vpop.permute.xlu0 %978 }
0x162b   :  { %v981_v30 = vmul.f32 %v2570_v22, %v979_v29 }
0x162d   :  { %983 = vrot.lane.b32.xlu0 %v981_v30, %s2621_s5 }
0x169b   :  { %v1216_v32 = vpop.permute.xlu1 %1215 }
0x169c   :  { %2327 = vmatmul.mubr.msk.f32.vlgmr.msra.gmra.mrb[12].mxu1 %vm186_vm3, %v1216_v32 }
0x169d   :  { %2482 = vmatpush3.bf16.msra.mxu1 %v2885_v52  ;;  %2348 = vmatprep.mubr.msk.f32.mxu1 %vm2618_vm2, %v2619_v8 }
0x169e   :  { %2483 = vmatprep.subr.bf16.mxu1 %v2617_v0 }
0x169f   :  { %v984_v33 = vpop.permute.xlu0 %983 }
0x16a0   :  { %v986_v34 = vadd.f32 %v984_v33, %v976_v31 }
0x16a1   :  { %2485 = vmatpush3.bf16.msra.mxu1 %v2895_v55 }
0x16a2   :  { %2573 = vtanh.f32 %v986_v34  ;;  %2492 = vmatprep.subr.bf16.mxu1 %v2617_v0 }
0x16ac   :  { %v2574_v35 = vpop.eup %2573 }
0x16ad   :  { %989 = vrot.lane.b32.xlu0 %v2574_v35, %s2620_s23 }
0x171f   :  { %v990_v63 = vpop.permute.xlu0 %989 }
0x1720   :  { %v992_v38 = vmul.f32 %v2570_v22, %v990_v63  ;;  %v1095_v22 = vadd.f32 %v2865_v37, %v2920_v5 }
0x1722   :  { %1009 = vrot.lane.b32.xlu0 %v992_v38, %s2621_s5 }
0x176f   :  { %v1285_v62 = vpop.f32.mrb[12].mxu1 }
0x1770   :  { %v1289_v42 = vadd.f32 %v1285_v62, %v1085_v39  ;;  %v2328_v43 = vpop.f32.mrb[13].mxu1 }
0x1771   :  { %v1100_v43 = vadd.f32 %v2920_v5, %v2871_v41 }
0x1772   :  { %v2057_v44 = vmul.f32 -1.442695, %v1289_v42 }
0x1774   :  { %2575 = vpow2.f32 %v2057_v44 }
0x177e   :  { %v2576_v45 = vpop.eup %2575 }
0x177f   :  { %v1293_v46 = vadd.f32 1.0, %v2576_v45 }
0x1781   :  { %2577 = vrcp.f32 %v1293_v46 }
0x178b   :  { %v2578_v47 = vpop.eup %2577 }
0x178c   :  { %v1296_v48 = vmul.f32 2.0, %v2578_v47  ;;  %v1298_v56 = vmul.f32 %v2578_v47, %v1207_v21 }
0x178e   :  { %v2058_v49 = vadd.f32 -1.0, %v1296_v48 }
0x1790   :  { %1300 = vrot.lane.b32.xlu1 %v2058_v49, %s2620_s23 }
0x1794   :  { %v1010_v50 = vpop.permute.xlu0 %1009 }
0x1795   :  { %2305 = vmatmul.mubr.msk.f32.gmra.mrb[20].mxu0 %vm186_vm3, %v1010_v50 }
0x1796   :  { %2337 = vmatprep.mubr.msk.f32.mxu0 %vm2618_vm2, %v2619_v8 }
0x1802   :  { %v1301_v36 = vpop.permute.xlu1 %1300 }
0x1803   :  { %v1303_v51 = vmul.f32 %v2578_v47, %v1301_v36 }
0x1805   :  { %1305 = vrot.lane.b32.xlu1 %v1303_v51, %s2621_s5 }
0x1868   :  { %v2946_v53 = vpop.f32.mrb[20].mxu0 }
0x1869   :  { %v2948_v54 = vpop.f32.mrb[21].mxu0 }
0x1877   :  { %v1306_v57 = vpop.permute.xlu1 %1305 }
0x1878   :  { %v1308_v58 = vadd.f32 %v1306_v57, %v1298_v56 }
0x187a   :  { %2579 = vtanh.f32 %v1308_v58 }
0x1884   :  { %v2580_v60 = vpop.eup %2579 }
0x1885   :  { %1311 = vrot.lane.b32.xlu1 %v2580_v60, %s2620_s23 }
0x18f7   :  { %v1312_v1 = vpop.permute.xlu1 %1311 }
0x18f8   :  { %v1314_v2 = vmul.f32 %v2578_v47, %v1312_v1 }
0x18fa   :  { %1316 = vrot.lane.b32.xlu1 %v1314_v2, %s2621_s5 }
0x196c   :  { %v1317_v3 = vpop.permute.xlu1 %1316 }
0x196d   :  { %2338 = vmatmul.mubr.msk.f32.vlgmr.msra.gmra.mrb[22].mxu0 %vm186_vm3, %v1317_v3 }
0x196e   :  { %2488 = vmatpush3.bf16.msra.mxu0 %v2885_v52  ;;  %2359 = vmatprep.mubr.msk.f32.mxu0 %vm2618_vm2, %v2619_v8 }
0x196f   :  { %2489 = vmatprep.subr.bf16.mxu0 %v2617_v0 }
0x1972   :  { %2491 = vmatpush3.bf16.msra.mxu0 %v2895_v55 }
0x1973   :  { %2498 = vmatprep.subr.bf16.mxu0 %v2617_v0 }
0x1a40   :  { %v1386_v7 = vpop.f32.mrb[22].mxu0 }
0x1a41   :  { %v1390_v9 = vadd.f32 %v1386_v7, %v1090_v6  ;;  %v2339_v11 = vpop.f32.mrb[23].mxu0  ;;  %v1105_v7 = vadd.f32 %v2869_v40, %v2920_v5 }
0x1a43   :  { %v2060_v13 = vmul.f32 -1.442695, %v1390_v9 }
0x1a45   :  { %2581 = vpow2.f32 %v2060_v13 }
0x1a4f   :  { %v2582_v14 = vpop.eup %2581 }
0x1a50   :  { %v1394_v4 = vadd.f32 1.0, %v2582_v14 }
0x1a52   :  { %2583 = vrcp.f32 %v1394_v4 }
0x1a5c   :  { %v2584_v15 = vpop.eup %2583 }
0x1a5d   :  { %v1397_v12 = vmul.f32 2.0, %v2584_v15  ;;  %v1399_v10 = vmul.f32 %v2584_v15, %v1308_v58 }
0x1a5f   :  { %v2061_v61 = vadd.f32 -1.0, %v1397_v12 }
0x1a61   :  { %1401 = vrot.lane.b32.xlu0 %v2061_v61, %s2620_s23 }
0x1ad3   :  { %v1402_v16 = vpop.permute.xlu0 %1401 }
0x1ad4   :  { %v1404_v17 = vmul.f32 %v2584_v15, %v1402_v16 }
0x1ad6   :  { %1406 = vrot.lane.b32.xlu1 %v1404_v17, %s2621_s5 }
0x1b48   :  { %v1407_v18 = vpop.permute.xlu1 %1406 }
0x1b49   :  { %v1409_v23 = vadd.f32 %v1407_v18, %v1399_v10 }
0x1b4b   :  { %2585 = vtanh.f32 %v1409_v23 }
0x1b55   :  { %v2586_v19 = vpop.eup %2585 }
0x1b56   :  { %1412 = vrot.lane.b32.xlu0 %v2586_v19, %s2620_s23 }
0x1bc8   :  { %v1413_v59 = vpop.permute.xlu0 %1412 }
0x1bc9   :  { %v1415_v20 = vmul.f32 %v2584_v15, %v1413_v59 }
0x1bcb   :  { %1417 = vrot.lane.b32.xlu1 %v1415_v20, %s2621_s5  ;;  %v1110_v20 = vadd.f32 %v2920_v5, %v2948_v54 }
0x1c3d   :  { %v1418_v21 = vpop.permute.xlu1 %1417 }
0x1c3e   :  { %2349 = vmatmul.mubr.msk.f32.vlgmr.msra.gmra.mrb[14].mxu1 %vm186_vm3, %v1418_v21 }
0x1c3f   :  { %2494 = vmatpush3.bf16.msra.mxu1 %v2885_v52  ;;  %2370 = vmatprep.mubr.msk.f32.mxu1 %vm2618_vm2, %v2619_v8 }
0x1c40   :  { %2495 = vmatprep.subr.bf16.mxu1 %v2617_v0 }
0x1c43   :  { %2497 = vmatpush3.bf16.msra.mxu1 %v2895_v55 }
0x1c44   :  { %2504 = vmatprep.subr.bf16.mxu1 %v2617_v0 }
0x1d11   :  { %v1487_v24 = vpop.f32.mrb[14].mxu1 }
0x1d12   :  { %v1491_v25 = vadd.f32 %v1487_v24, %v1095_v22  ;;  %v2350_v26 = vpop.f32.mrb[15].mxu1 }
0x1d14   :  { %v2063_v27 = vmul.f32 -1.442695, %v1491_v25 }
0x1d16   :  { %2587 = vpow2.f32 %v2063_v27 }
0x1d20   :  { %v2588_v28 = vpop.eup %2587 }
0x1d21   :  { %v1495_v29 = vadd.f32 1.0, %v2588_v28 }
0x1d23   :  { %2589 = vrcp.f32 %v1495_v29 }
0x1d2d   :  { %v2590_v30 = vpop.eup %2589 }
0x1d2e   :  { %v1498_v32 = vmul.f32 2.0, %v2590_v30  ;;  %v1500_v35 = vmul.f32 %v2590_v30, %v1409_v23 }
0x1d30   :  { %v2064_v31 = vadd.f32 -1.0, %v1498_v32 }
0x1d32   :  { %1502 = vrot.lane.b32.xlu0 %v2064_v31, %s2620_s23 }
0x1da4   :  { %v1503_v33 = vpop.permute.xlu0 %1502 }
0x1da5   :  { %v1505_v34 = vmul.f32 %v2590_v30, %v1503_v33 }
0x1da7   :  { %1507 = vrot.lane.b32.xlu1 %v1505_v34, %s2621_s5 }
0x1e19   :  { %v1508_v63 = vpop.permute.xlu1 %1507 }
0x1e1a   :  { %v1510_v37 = vadd.f32 %v1508_v63, %v1500_v35 }
0x1e1c   :  { %2591 = vtanh.f32 %v1510_v37 }
0x1e26   :  { %v2592_v38 = vpop.eup %2591 }
0x1e27   :  { %1513 = vrot.lane.b32.xlu0 %v2592_v38, %s2620_s23  ;;  %v1115_v38 = vadd.f32 %v2946_v53, %v2920_v5  ;;  %v1921_v53 = vld [vmem:[%s3047_s7] sm:$0xff] }
0x1e99   :  { %v1514_v39 = vpop.permute.xlu0 %1513 }
0x1e9a   :  { %v1516_v62 = vmul.f32 %v2590_v30, %v1514_v39 }
0x1e9c   :  { %1518 = vrot.lane.b32.xlu1 %v1516_v62, %s2621_s5 }
0x1f0e   :  { %v1519_v42 = vpop.permute.xlu1 %1518 }
0x1f0f   :  { %2360 = vmatmul.mubr.msk.f32.vlgmr.msra.gmra.mrb[24].mxu0 %vm186_vm3, %v1519_v42 }
0x1f10   :  { %2500 = vmatpush3.bf16.msra.mxu0 %v2885_v52  ;;  %2381 = vmatprep.mubr.msk.f32.mxu0 %vm2618_vm2, %v2619_v8 }
0x1f11   :  { %2501 = vmatprep.subr.bf16.mxu0 %v2617_v0 }
0x1f14   :  { %2503 = vmatpush3.bf16.msra.mxu0 %v2895_v55 }
0x1f15   :  { %2510 = vmatprep.subr.bf16.mxu0 %v2617_v0 }
0x1fe2   :  { %v1588_v44 = vpop.f32.mrb[24].mxu0 }
0x1fe3   :  { %v1592_v45 = vadd.f32 %v1588_v44, %v1100_v43  ;;  %v2361_v46 = vpop.f32.mrb[25].mxu0 }
0x1fe5   :  { %v2066_v47 = vmul.f32 -1.442695, %v1592_v45 }
0x1fe7   :  { %2593 = vpow2.f32 %v2066_v47 }
0x1ff1   :  { %v2594_v48 = vpop.eup %2593 }
0x1ff2   :  { %v1596_v49 = vadd.f32 1.0, %v2594_v48 }
0x1ff4   :  { %2595 = vrcp.f32 %v1596_v49 }
0x1ffe   :  { %v2596_v50 = vpop.eup %2595 }
0x1fff   :  { %v1599_v36 = vmul.f32 2.0, %v2596_v50  ;;  %v1601_v58 = vmul.f32 %v2596_v50, %v1510_v37 }
0x2001   :  { %v2067_v51 = vadd.f32 -1.0, %v1599_v36 }
0x2003   :  { %1603 = vrot.lane.b32.xlu0 %v2067_v51, %s2620_s23 }
0x2075   :  { %v1604_v56 = vpop.permute.xlu0 %1603 }
0x2076   :  { %v1606_v57 = vmul.f32 %v2596_v50, %v1604_v56  ;;  %v1922_v56 = vld [vmem:[%s3047_s7 + $0x8] sm:$0xff] }
0x2078   :  { %1608 = vrot.lane.b32.xlu1 %v1606_v57, %s2621_s5  ;;  %v1923_v57 = vld [vmem:[%s3047_s7 + $0x10] sm:$0xff] }
0x20ea   :  { %v1609_v60 = vpop.permute.xlu1 %1608 }
0x20eb   :  { %v1611_v41 = vadd.f32 %v1609_v60, %v1601_v58  ;;  %v2511_v58 = vpack.c.bf16 %v1922_v56, %v1921_v53  ;;  %v1924_v60 = vld [vmem:[%s3047_s7 + $0x18] sm:$0xff] }
0x20ed   :  { %2597 = vtanh.f32 %v1611_v41 }
0x20f7   :  { %v2598_v1 = vpop.eup %2597 }
0x20f8   :  { %1614 = vrot.lane.b32.xlu0 %v2598_v1, %s2620_s23 }
0x216a   :  { %v1615_v2 = vpop.permute.xlu0 %1614 }
0x216b   :  { %v1617_v3 = vmul.f32 %v2596_v50, %v1615_v2 }
0x216d   :  { %1619 = vrot.lane.b32.xlu1 %v1617_v3, %s2621_s5 }
0x21df   :  { %v1620_v6 = vpop.permute.xlu1 %1619 }
0x21e0   :  { %2371 = vmatmul.mubr.msk.f32.vlgmr.msra.gmra.mrb[16].mxu1 %vm186_vm3, %v1620_v6 }
0x21e1   :  { %2506 = vmatpush3.bf16.msra.mxu1 %v2885_v52  ;;  %2392 = vmatprep.mubr.msk.f32.mxu1 %vm2618_vm2, %v2619_v8 }
0x21e2   :  { %2507 = vmatprep.subr.bf16.mxu1 %v2617_v0 }
0x21e5   :  { %2509 = vmatpush3.bf16.msra.mxu1 %v2895_v55 }
0x22b3   :  { %v1689_v9 = vpop.f32.mrb[16].mxu1 }
0x22b4   :  { %v1693_v11 = vadd.f32 %v1689_v9, %v1105_v7  ;;  %v2372_v13 = vpop.f32.mrb[17].mxu1  ;;  %v2077_v7 = vld [vmem:[%s3048_s8] ss:$0 sm:$0xff] }
0x22b6   :  { %v2069_v14 = vmul.f32 -1.442695, %v1693_v11 }
0x22b8   :  { %2599 = vpow2.f32 %v2069_v14 }
0x22c2   :  { %v2600_v4 = vpop.eup %2599 }
0x22c3   :  { %v1697_v15 = vadd.f32 1.0, %v2600_v4 }
0x22c5   :  { %2601 = vrcp.f32 %v1697_v15 }
0x22cf   :  { %v2602_v12 = vpop.eup %2601 }
0x22d0   :  { %v1700_v52 = vmul.f32 2.0, %v2602_v12  ;;  %v1702_v55 = vmul.f32 %v2602_v12, %v1611_v41  ;;  %v2514_v41 = vpack.c.bf16 %v1924_v60, %v1923_v57 }
0x22d2   :  { %v2070_v61 = vadd.f32 -1.0, %v1700_v52 }
0x22d4   :  { %1704 = vrot.lane.b32.xlu0 %v2070_v61, %s2620_s23 }
0x2346   :  { %v1705_v16 = vpop.permute.xlu0 %1704 }
0x2347   :  { %v1707_v17 = vmul.f32 %v2602_v12, %v1705_v16 }
0x2349   :  { %1709 = vrot.lane.b32.xlu1 %v1707_v17, %s2621_s5 }
0x23bb   :  { %v1710_v10 = vpop.permute.xlu1 %1709 }
0x23bc   :  { %v1712_v40 = vadd.f32 %v1710_v10, %v1702_v55 }
0x23be   :  { %2603 = vtanh.f32 %v1712_v40 }
0x23c8   :  { %v2604_v18 = vpop.eup %2603 }
0x23c9   :  { %1715 = vrot.lane.b32.xlu0 %v2604_v18, %s2620_s23 }
0x243b   :  { %v1716_v23 = vpop.permute.xlu0 %1715 }
0x243c   :  { %v1718_v19 = vmul.f32 %v2602_v12, %v1716_v23 }
0x243e   :  { %1720 = vrot.lane.b32.xlu1 %v1718_v19, %s2621_s5 }
0x24b0   :  { %v1721_v59 = vpop.permute.xlu1 %1720 }
0x24b1   :  { %2382 = vmatmul.mubr.msk.f32.vlgmr.msra.gmra.mrb[26].mxu0 %vm186_vm3, %v1721_v59 }
0x24b2   :  { %2403 = vmatprep.mubr.msk.f32.mxu0 %vm2618_vm2, %v2619_v8  ;;  %2512 = vmatpush3.bf16.msra.mxu0 %v2511_v58 }
0x24b3   :  { %2513 = vmatprep.subr.bf16.mxu0 %v2617_v0 }
0x24b6   :  { %2515 = vmatpush3.bf16.msra.mxu0 %v2514_v41 }
0x2584   :  { %v1790_v21 = vpop.f32.mrb[26].mxu0 }
0x2585   :  { %v1794_v22 = vadd.f32 %v1790_v21, %v1110_v20  ;;  %v2383_v24 = vpop.f32.mrb[27].mxu0 }
0x2587   :  { %v2072_v25 = vmul.f32 -1.442695, %v1794_v22 }
0x2589   :  { %2605 = vpow2.f32 %v2072_v25 }
0x2593   :  { %v2606_v26 = vpop.eup %2605 }
0x2594   :  { %v1798_v27 = vadd.f32 1.0, %v2606_v26 }
0x2596   :  { %2607 = vrcp.f32 %v1798_v27 }
0x25a0   :  { %v2608_v28 = vpop.eup %2607 }
0x25a1   :  { %v1801_v29 = vmul.f32 2.0, %v2608_v28  ;;  %v1803_v8 = vmul.f32 %v2608_v28, %v1712_v40 }
0x25a3   :  { %v2073_v30 = vadd.f32 -1.0, %v1801_v29 }
0x25a5   :  { %1805 = vrot.lane.b32.xlu0 %v2073_v30, %s2620_s23 }
0x2617   :  { %v1806_v32 = vpop.permute.xlu0 %1805 }
0x2618   :  { %v1808_v31 = vmul.f32 %v2608_v28, %v1806_v32 }
0x261a   :  { %1810 = vrot.lane.b32.xlu1 %v1808_v31, %s2621_s5 }
0x268c   :  { %v1811_v33 = vpop.permute.xlu1 %1810 }
0x268d   :  { %v1813_v54 = vadd.f32 %v1811_v33, %v1803_v8 }
0x268f   :  { %2609 = vtanh.f32 %v1813_v54 }
0x2699   :  { %v2610_v34 = vpop.eup %2609 }
0x269a   :  { %1816 = vrot.lane.b32.xlu0 %v2610_v34, %s2620_s23 }
0x270c   :  { %v1817_v35 = vpop.permute.xlu0 %1816 }
0x270d   :  { %v1819_v63 = vmul.f32 %v2608_v28, %v1817_v35 }
0x270f   :  { %1821 = vrot.lane.b32.xlu1 %v1819_v63, %s2621_s5 }
0x2781   :  { %v1822_v37 = vpop.permute.xlu1 %1821 }
0x2782   :  { %2393 = vmatmul.mubr.msk.f32.vlgmr.msra.gmra.mrb[18].mxu1 %vm186_vm3, %v1822_v37 }
0x2855   :  { %v1891_v39 = vpop.f32.mrb[18].mxu1 }
0x2856   :  { %v1895_v62 = vadd.f32 %v1891_v39, %v1115_v38  ;;  %v2394_v42 = vpop.f32.mrb[19].mxu1 }
0x2858   :  { %v2075_v43 = vmul.f32 -1.442695, %v1895_v62 }
0x285a   :  { %2611 = vpow2.f32 %v2075_v43 }
0x2864   :  { %v2612_v44 = vpop.eup %2611 }
0x2865   :  { %v1899_v45 = vadd.f32 1.0, %v2612_v44 }
0x2867   :  { %2613 = vrcp.f32 %v1899_v45 }
0x2871   :  { %v2614_v46 = vpop.eup %2613 }
0x2872   :  { %v1902_v47 = vmul.f32 2.0, %v2614_v46  ;;  %v1904_v36 = vmul.f32 %v2614_v46, %v1813_v54 }
0x2874   :  { %v2076_v48 = vadd.f32 -1.0, %v1902_v47 }
0x2876   :  { %1906 = vrot.lane.b32.xlu0 %v2076_v48, %s2620_s23 }
0x28e8   :  { %v1907_v49 = vpop.permute.xlu0 %1906 }
0x28e9   :  { %v1909_v50 = vmul.f32 %v2614_v46, %v1907_v49 }
0x28eb   :  { %1911 = vrot.lane.b32.xlu1 %v1909_v50, %s2621_s5 }
0x295d   :  { %v1912_v51 = vpop.permute.xlu1 %1911 }
0x295e   :  { %v1914_v5 = vadd.f32 %v1912_v51, %v1904_v36 }
0x2960   :  { %2615 = vtanh.f32 %v1914_v5 }
0x296a   :  { %v2616_v1 = vpop.eup %2615 }
0x296b   :  { %1917 = vrot.lane.b32.xlu0 %v2616_v1, %s2620_s23 }
0x29dd   :  { %v1918_v2 = vpop.permute.xlu0 %1917 }
0x29de   :  { %v1920_v3 = vmul.f32 %v2614_v46, %v1918_v2 }
0x29e0   :  { %1933 = vrot.lane.b32.xlu1 %v1920_v3, %s2621_s5 }
0x2a52   :  { %v1934_v6 = vpop.permute.xlu1 %1933 }
0x2a53   :  { %2404 = vmatmul.mubr.msk.f32.vlgmr.msra.gmra.mrb[28].mxu0 %vm186_vm3, %v1934_v6 }
0x2b26   :  { %v2003_v9 = vpop.f32.mrb[28].mxu0 }
0x2b27   :  { %v2004_v11 = vadd.f32 %v2077_v7, %v2003_v9  ;;  %v2405_v13 = vpop.f32.mrb[29].mxu0 }
0x2b29   :  { %2007 = vst.msk [vmem:[%s3049_s9] sm:$0xff] %vm52_vm1, %v2004_v11 }

</bundles_post_ra>
